<compile_context>
chip_gen: v6e
topology: v6e:2x2x1
jax: 0.10.0
libtpu: 0.0.40
codegen_flags: <defaults>
</compile_context>

<pallas_src>
import math

import jax
import jax.numpy as jnp
from jax.experimental import pallas as pl
from jax.experimental.pallas import tpu as pltpu

LEAKY_SLOPE = 0.2
LANE = 128


def _round_up(x, m):
    return ((x + m - 1) // m) * m


def _pad2(a, rows, cols):
    r, c = a.shape
    return jnp.pad(a, ((0, rows - r), (0, cols - c)))


# ----------------------------------------------------------------------------
# Fused kernel body: base MLP -> concat head layer 0 -> per-head stacked layers
# Activations stay in vregs for the whole chain; only the z tile streams in and
# the lane-padded concatenated head output streams out.
# ----------------------------------------------------------------------------
def _make_fused_kernel(n_base, n_head_layers, num_heads, hidden_pad, d_pad):
    def kernel(x_ref, *refs):
        out_ref = refs[-1]
        prm = refs[:-1]  # base (W,b)*, fused head-0 (W,b), stacked (W,b)*

        def linear(h, w_ref, b_ref):
            w = w_ref[...]
            b = b_ref[...].astype(jnp.float32)
            return jnp.dot(h.astype(w.dtype), w,
                           preferred_element_type=jnp.float32) + b

        def leaky(h):
            return jnp.maximum(h, LEAKY_SLOPE * h)  # single VALU max+mul, f32

        h = x_ref[...].astype(jnp.float32)
        k = 0
        # base_net
        for i in range(n_base):
            h = linear(h, prm[k], prm[k + 1])
            k += 2
            if i != n_base - 1:
                h = leaky(h)

        # head layer 0: all heads consume the same base_fea -> weights are
        # concatenated along the output dim (no wasted FLOPs).
        h = linear(h, prm[k], prm[k + 1])
        k += 2

        if n_head_layers == 1:
            out_ref[...] = h.astype(out_ref.dtype)
            return

        h = leaky(h)
        # deeper head layers: per-head stacked weights (no block-diag zeros).
        # Per-head chunks are 128-lane aligned, so slices and stores are cheap.
        for hd in range(num_heads):
            hh = h[:, hd * hidden_pad:(hd + 1) * hidden_pad]
            for li in range(n_head_layers - 1):
                w = prm[k + 2 * li][hd]
                b = prm[k + 2 * li + 1][hd].astype(jnp.float32)
                hh = jnp.dot(hh.astype(w.dtype), w,
                             preferred_element_type=jnp.float32) + b
                if li != n_head_layers - 2:
                    hh = leaky(hh)
            out_ref[:, hd * d_pad:(hd + 1) * d_pad] = hh.astype(out_ref.dtype)

    return kernel


# ----------------------------------------------------------------------------
# One-time parameter fusion / padding / dtype cast (hoisted out of forward)
# ----------------------------------------------------------------------------
def prepare_fused_params(params, head_dim_dict, *, weight_dtype=jnp.bfloat16,
                         lane=LANE):
    head_names = list(head_dim_dict.keys())
    num_heads = len(head_names)
    base_raw = params["base_net"]
    n_base = len(base_raw)
    n_head = len(params[head_names[0]])
    hidden = base_raw[-1][0].shape[1]
    hidden_pad = _round_up(hidden, lane)
    d_pad = _round_up(max(head_dim_dict.values()), lane)

    def cast_w(w):
        return w.astype(weight_dtype)

    # base_net: pad hidden widths to a lane multiple (zero weights/bias in the
    # pad stay exactly 0 through LeakyReLU, so results are unchanged).
    base = []
    for i, (w, b) in enumerate(base_raw):
        rows = w.shape[0] if i == 0 else hidden_pad
        base.append((cast_w(_pad2(w, rows, hidden_pad)),
                     _pad2(b, 1, hidden_pad).astype(jnp.float32)))

    # head layer 0: shared base_fea input -> concat along output dim.
    out0_pad = hidden_pad if n_head > 1 else d_pad
    w0 = jnp.concatenate(
        [_pad2(params[n][0][0], hidden_pad, out0_pad) for n in head_names], axis=1)
    b0 = jnp.concatenate(
        [_pad2(params[n][0][1], 1, out0_pad) for n in head_names], axis=1)
    head0 = (cast_w(w0), b0.astype(jnp.float32))

    # deeper head layers: per-head stacked (num_heads, K, N) weights; one small
    # matmul per head instead of an inflated block-diagonal matmul.
    stacked = []
    for li in range(1, n_head):
        npad = hidden_pad if li < n_head - 1 else d_pad
        ws = jnp.stack([_pad2(params[n][li][0], hidden_pad, npad)
                        for n in head_names])
        bs = jnp.stack([_pad2(params[n][li][1], 1, npad) for n in head_names])
        stacked.append((cast_w(ws), bs.astype(jnp.float32)))

    offsets = {name: (h * d_pad, head_dim_dict[name])
               for h, name in enumerate(head_names)}

    flat = []
    for w, b in base + [head0] + stacked:
        flat.append(w)
        flat.append(b)

    return dict(flat=flat, n_base=n_base, n_head_layers=n_head,
                num_heads=num_heads, hidden_pad=hidden_pad, d_pad=d_pad,
                out_width=num_heads * d_pad, offsets=offsets)


# ----------------------------------------------------------------------------
# Batch tiling: multiple of 8, minimal padding waste, >=2 tiles when possible
# so both v7x TensorCores get work via the "parallel" grid axis.
# ----------------------------------------------------------------------------
def _choose_batch_tiling(batch, batch_tile):
    padded_batch = _round_up(batch, 8)
    tb_cap = max(8, _round_up(batch_tile, 8))
    n_tiles = pl.cdiv(padded_batch, tb_cap)
    if n_tiles == 1 and padded_batch >= 16:
        n_tiles = 2
    tb = _round_up(pl.cdiv(padded_batch, n_tiles), 8)
    padded_b = tb * pl.cdiv(padded_batch, tb)
    return tb, padded_b


def multi_head_mapping_forward(z, fused, *, batch_tile=512,
                               out_dtype=jnp.float32):
    """Forward pass of MultiHeadMappingNetwork in one fused pallas_call."""
    batch, z_dim = z.shape
    tb, padded_b = _choose_batch_tiling(batch, batch_tile)
    if padded_b != batch:
        z = jnp.pad(z, ((0, padded_b - batch), (0, 0)))

    flat = fused["flat"]
    out_width = fused["out_width"]

    kernel = _make_fused_kernel(fused["n_base"], fused["n_head_layers"],
                                fused["num_heads"], fused["hidden_pad"],
                                fused["d_pad"])

    # explicit scoped-VMEM budget: single-buffered resident weights +
    # double-buffered z / out tiles + f32 activation temporaries + headroom.
    weight_bytes = sum(a.size * a.dtype.itemsize for a in flat)
    widest = max(fused["hidden_pad"] * fused["num_heads"], out_width, z_dim)
    io_bytes = (2 * tb * z_dim * z.dtype.itemsize
                + 2 * tb * out_width * jnp.dtype(out_dtype).itemsize)
    act_bytes = 6 * tb * widest * 4
    vmem_limit = int(min(max(weight_bytes + io_bytes + act_bytes + (4 << 20),
                             32 << 20), 64 << 20))

    def build(weight_pipeline_mode):
        def const_spec(a):
            zeros = (0,) * a.ndim
            # grid-invariant full-array block: resident in VMEM across steps
            return pl.BlockSpec(a.shape, lambda i, _z=zeros: _z,
                                pipeline_mode=weight_pipeline_mode)

        in_specs = [pl.BlockSpec((tb, z_dim), lambda i: (i, 0))]
        in_specs += [const_spec(a) for a in flat]
        out_spec = pl.BlockSpec((tb, out_width), lambda i: (i, 0))
        return pl.pallas_call(
            kernel,
            out_shape=jax.ShapeDtypeStruct((padded_b, out_width), out_dtype),
            grid=(padded_b // tb,),
            in_specs=in_specs,
            out_specs=out_spec,
            compiler_params=pltpu.CompilerParams(
                dimension_semantics=("parallel",),
                vmem_limit_bytes=vmem_limit,
            ),
        )

    try:
        # single-buffer the constant weight blocks (halves their VMEM footprint)
        out = jax.block_until_ready(build(pl.Buffered(1))(z, *flat))
    except Exception:
        # fallback for jax builds that reject pipeline_mode on these blocks
        out = jax.block_until_ready(build(None)(z, *flat))

    return {name: out[:batch, off:off + hd]
            for name, (off, hd) in fused["offsets"].items()}


# ----------------------------------------------------------------------------
# Parameter construction (deterministic, mirrors the PyTorch __init__)
# ----------------------------------------------------------------------------
def _kaiming_leaky_std(fan_in, a=0.2):
    gain = math.sqrt(2.0 / (1.0 + a * a))
    return gain / math.sqrt(fan_in)


def _init_linear(key, in_dim, out_dim, kaiming_leaky=True):
    kw, kb = jax.random.split(key)
    if kaiming_leaky:
        std = _kaiming_leaky_std(in_dim)
        w = jax.random.normal(kw, (in_dim, out_dim), jnp.float32) * std
    else:
        bound = 1.0 / math.sqrt(in_dim)
        w = jax.random.uniform(kw, (in_dim, out_dim), jnp.float32, -bound, bound)
    bbound = 1.0 / math.sqrt(in_dim)
    b = jax.random.uniform(kb, (1, out_dim), jnp.float32, -bbound, bbound)
    return w, b


def build_multi_head_mapping_params(key, z_dim, hidden_dim, base_layers,
                                    head_layers, head_dim_dict):
    params = {}
    base = []
    for i in range(base_layers):
        in_dim = z_dim if i == 0 else hidden_dim
        key, sub = jax.random.split(key)
        base.append(_init_linear(sub, in_dim, hidden_dim, kaiming_leaky=True))
    params["base_net"] = base

    for name, head_dim in head_dim_dict.items():
        head = []
        in_dim = hidden_dim
        for i in range(head_layers):
            out_dim = head_dim if i == head_layers - 1 else hidden_dim
            key, sub = jax.random.split(key)
            w, b = _init_linear(sub, in_dim, out_dim, kaiming_leaky=False)
            if i == head_layers - 1:
                w = w * 0.25  # matches `head_net[-1].weight *= 0.25`
            head.append((w, b))
            in_dim = out_dim
        params[name] = head
    return params
# TODO(synk): print_number_params() is torch_utils logging only; no compute to port.


# ----------------------------------------------------------------------------
# Pure-JAX reference (un-fused, per-head) for verification
# ----------------------------------------------------------------------------
def _mlp_ref(x, layer_params):
    h = x
    n = len(layer_params)
    for i, (w, b) in enumerate(layer_params):
        h = h @ w + b
        if i != n - 1:
            h = jnp.where(h > 0, h, LEAKY_SLOPE * h)
    return h


def multi_head_mapping_ref(z, params, head_dim_dict):
    base_fea = _mlp_ref(z, params["base_net"])
    return {name: _mlp_ref(base_fea, params[name]) for name in head_dim_dict}


# ----------------------------------------------------------------------------
if __name__ == "__main__":
    z_dim = 32
    hidden_dim = 32
    base_layers = 3
    head_layers = 2
    head_dim_dict = {"head_a": 16, "head_b": 24}

    key = jax.random.PRNGKey(0)
    kz1, kz2, kp = jax.random.split(key, 3)

    params = build_multi_head_mapping_params(
        kp, z_dim, hidden_dim, base_layers, head_layers, head_dim_dict)

    # one-time fusion / padding / dtype cast (hoisted out of the per-call path)
    fused_bf16 = prepare_fused_params(params, head_dim_dict)                       # bf16 default
    fused_f32 = prepare_fused_params(params, head_dim_dict,
                                     weight_dtype=jnp.float32)

    z1 = jax.random.normal(kz1, (24, z_dim), jnp.float32)   # -> 2 batch tiles of 16
    z2 = jax.random.normal(kz2, (5, z_dim), jnp.float32)    # ragged -> padded 8-row tile

    ref1 = multi_head_mapping_ref(z1, params, head_dim_dict)
    ref2 = multi_head_mapping_ref(z2, params, head_dim_dict)

    # exact-precision path (f32 weights): strict check vs reference
    out1_f32 = multi_head_mapping_forward(z1, fused_f32)
    out2_f32 = multi_head_mapping_forward(z2, fused_f32)
    out1_f32, out2_f32 = jax.tree_util.tree_map(
        jax.block_until_ready, (out1_f32, out2_f32))

    # default bf16-weight path (MXU-native): looser tolerance vs f32 reference
    out1_bf16 = multi_head_mapping_forward(z1, fused_bf16)
    out1_bf16 = jax.tree_util.tree_map(jax.block_until_ready, out1_bf16)

    for out, ref, batch in ((out1_f32, ref1, 24), (out2_f32, ref2, 5)):
        for name, head_dim in head_dim_dict.items():
            assert out[name].shape == (batch, head_dim), (name, out[name].shape)
            assert jnp.allclose(out[name], ref[name], atol=1e-5, rtol=1e-5), name

    for name, head_dim in head_dim_dict.items():
        assert out1_bf16[name].shape == (24, head_dim), (name, out1_bf16[name].shape)
        assert jnp.allclose(out1_bf16[name], ref1[name], atol=1e-1, rtol=1e-1), name

    print("KERNEL_OK")
</pallas_src>

<mosaic_0001>
module attributes {stable_mosaic.version = 11 : i64} {
  func.func @kernel(%arg0: i32, %arg1: memref<16x32xf32, #tpu.memory_space<vmem>>, %arg2: memref<32x128xf32, #tpu.memory_space<vmem>>, %arg3: memref<1x128xf32, #tpu.memory_space<vmem>>, %arg4: memref<128x128xf32, #tpu.memory_space<vmem>>, %arg5: memref<1x128xf32, #tpu.memory_space<vmem>>, %arg6: memref<128x128xf32, #tpu.memory_space<vmem>>, %arg7: memref<1x128xf32, #tpu.memory_space<vmem>>, %arg8: memref<128x256xf32, #tpu.memory_space<vmem>>, %arg9: memref<1x256xf32, #tpu.memory_space<vmem>>, %arg10: memref<2x128x128xf32, #tpu.memory_space<vmem>>, %arg11: memref<2x1x128xf32, #tpu.memory_space<vmem>>, %arg12: memref<16x256xf32, #tpu.memory_space<vmem>>) attributes {dimension_semantics = [#tpu.dimension_semantics<parallel>], iteration_bounds = array<i64: 2>, scalar_prefetch = 0 : i64, scratch_operands = 0 : i64, tpu.core_type = #tpu.core_type<tc>, window_params = [{transform_indices = @transform_0, window_bounds = array<i64: 16, 32>}, {pipeline_mode = #tpu.pipeline_mode<synchronous>, transform_indices = @transform_1, window_bounds = array<i64: 32, 128>}, {pipeline_mode = #tpu.pipeline_mode<synchronous>, transform_indices = @transform_2, window_bounds = array<i64: 1, 128>}, {pipeline_mode = #tpu.pipeline_mode<synchronous>, transform_indices = @transform_3, window_bounds = array<i64: 128, 128>}, {pipeline_mode = #tpu.pipeline_mode<synchronous>, transform_indices = @transform_4, window_bounds = array<i64: 1, 128>}, {pipeline_mode = #tpu.pipeline_mode<synchronous>, transform_indices = @transform_5, window_bounds = array<i64: 128, 128>}, {pipeline_mode = #tpu.pipeline_mode<synchronous>, transform_indices = @transform_6, window_bounds = array<i64: 1, 128>}, {pipeline_mode = #tpu.pipeline_mode<synchronous>, transform_indices = @transform_7, window_bounds = array<i64: 128, 256>}, {pipeline_mode = #tpu.pipeline_mode<synchronous>, transform_indices = @transform_8, window_bounds = array<i64: 1, 256>}, {pipeline_mode = #tpu.pipeline_mode<synchronous>, transform_indices = @transform_9, window_bounds = array<i64: 2, 128, 128>}, {pipeline_mode = #tpu.pipeline_mode<synchronous>, transform_indices = @transform_10, window_bounds = array<i64: 2, 1, 128>}, {transform_indices = @transform_11, window_bounds = array<i64: 16, 256>}]} {
    %c0 = arith.constant 0 : index
    %c0_0 = arith.constant 0 : index
    %0 = vector.load %arg1[%c0, %c0_0] : memref<16x32xf32, #tpu.memory_space<vmem>>, vector<16x32xf32>
    %c0_1 = arith.constant 0 : index
    %c0_2 = arith.constant 0 : index
    %1 = vector.load %arg2[%c0_1, %c0_2] : memref<32x128xf32, #tpu.memory_space<vmem>>, vector<32x128xf32>
    %c0_3 = arith.constant 0 : index
    %c0_4 = arith.constant 0 : index
    %2 = vector.load %arg3[%c0_3, %c0_4] : memref<1x128xf32, #tpu.memory_space<vmem>>, vector<1x128xf32>
    %cst = arith.constant dense<0.000000e+00> : vector<16x128xf32>
    %3 = tpu.matmul %0, %1, %cst {dimension_numbers = #tpu.dot_dimension_numbers<[1], [0], [0], [1], [0, 0, 1, 1], [], []>} : vector<16x32xf32>, vector<32x128xf32>, vector<16x128xf32> -> vector<16x128xf32>
    %4 = vector.broadcast %2 : vector<1x128xf32> to vector<16x128xf32>
    %5 = arith.addf %3, %4 : vector<16x128xf32>
    %cst_5 = arith.constant 2.000000e-01 : f32
    %6 = vector.broadcast %cst_5 : f32 to vector<16x128xf32>
    %7 = arith.mulf %6, %5 : vector<16x128xf32>
    %8 = arith.maximumf %5, %7 : vector<16x128xf32>
    %c0_6 = arith.constant 0 : index
    %c0_7 = arith.constant 0 : index
    %9 = vector.load %arg4[%c0_6, %c0_7] : memref<128x128xf32, #tpu.memory_space<vmem>>, vector<128x128xf32>
    %c0_8 = arith.constant 0 : index
    %c0_9 = arith.constant 0 : index
    %10 = vector.load %arg5[%c0_8, %c0_9] : memref<1x128xf32, #tpu.memory_space<vmem>>, vector<1x128xf32>
    %cst_10 = arith.constant dense<0.000000e+00> : vector<16x128xf32>
    %11 = tpu.matmul %8, %9, %cst_10 {dimension_numbers = #tpu.dot_dimension_numbers<[1], [0], [0], [1], [0, 0, 1, 1], [], []>} : vector<16x128xf32>, vector<128x128xf32>, vector<16x128xf32> -> vector<16x128xf32>
    %12 = vector.broadcast %10 : vector<1x128xf32> to vector<16x128xf32>
    %13 = arith.addf %11, %12 : vector<16x128xf32>
    %cst_11 = arith.constant 2.000000e-01 : f32
    %14 = vector.broadcast %cst_11 : f32 to vector<16x128xf32>
    %15 = arith.mulf %14, %13 : vector<16x128xf32>
    %16 = arith.maximumf %13, %15 : vector<16x128xf32>
    %c0_12 = arith.constant 0 : index
    %c0_13 = arith.constant 0 : index
    %17 = vector.load %arg6[%c0_12, %c0_13] : memref<128x128xf32, #tpu.memory_space<vmem>>, vector<128x128xf32>
    %c0_14 = arith.constant 0 : index
    %c0_15 = arith.constant 0 : index
    %18 = vector.load %arg7[%c0_14, %c0_15] : memref<1x128xf32, #tpu.memory_space<vmem>>, vector<1x128xf32>
    %cst_16 = arith.constant dense<0.000000e+00> : vector<16x128xf32>
    %19 = tpu.matmul %16, %17, %cst_16 {dimension_numbers = #tpu.dot_dimension_numbers<[1], [0], [0], [1], [0, 0, 1, 1], [], []>} : vector<16x128xf32>, vector<128x128xf32>, vector<16x128xf32> -> vector<16x128xf32>
    %20 = vector.broadcast %18 : vector<1x128xf32> to vector<16x128xf32>
    %21 = arith.addf %19, %20 : vector<16x128xf32>
    %c0_17 = arith.constant 0 : index
    %c0_18 = arith.constant 0 : index
    %22 = vector.load %arg8[%c0_17, %c0_18] : memref<128x256xf32, #tpu.memory_space<vmem>>, vector<128x256xf32>
    %c0_19 = arith.constant 0 : index
    %c0_20 = arith.constant 0 : index
    %23 = vector.load %arg9[%c0_19, %c0_20] : memref<1x256xf32, #tpu.memory_space<vmem>>, vector<1x256xf32>
    %cst_21 = arith.constant dense<0.000000e+00> : vector<16x256xf32>
    %24 = tpu.matmul %21, %22, %cst_21 {dimension_numbers = #tpu.dot_dimension_numbers<[1], [0], [0], [1], [0, 0, 1, 1], [], []>} : vector<16x128xf32>, vector<128x256xf32>, vector<16x256xf32> -> vector<16x256xf32>
    %25 = vector.broadcast %23 : vector<1x256xf32> to vector<16x256xf32>
    %26 = arith.addf %24, %25 : vector<16x256xf32>
    %cst_22 = arith.constant 2.000000e-01 : f32
    %27 = vector.broadcast %cst_22 : f32 to vector<16x256xf32>
    %28 = arith.mulf %27, %26 : vector<16x256xf32>
    %29 = arith.maximumf %26, %28 : vector<16x256xf32>
    %30 = vector.extract_strided_slice %29 {offsets = [0, 0], sizes = [16, 128], strides = [1, 1]} : vector<16x256xf32> to vector<16x128xf32>
    %c0_23 = arith.constant 0 : index
    %c0_24 = arith.constant 0 : index
    %c0_25 = arith.constant 0 : index
    %31 = vector.load %arg10[%c0_23, %c0_24, %c0_25] : memref<2x128x128xf32, #tpu.memory_space<vmem>>, vector<1x128x128xf32>
    %32 = vector.shape_cast %31 : vector<1x128x128xf32> to vector<128x128xf32>
    %c0_26 = arith.constant 0 : index
    %c0_27 = arith.constant 0 : index
    %c0_28 = arith.constant 0 : index
    %33 = vector.load %arg11[%c0_26, %c0_27, %c0_28] : memref<2x1x128xf32, #tpu.memory_space<vmem>>, vector<1x1x128xf32>
    %34 = vector.shape_cast %33 : vector<1x1x128xf32> to vector<1x128xf32>
    %cst_29 = arith.constant dense<0.000000e+00> : vector<16x128xf32>
    %35 = tpu.matmul %30, %32, %cst_29 {dimension_numbers = #tpu.dot_dimension_numbers<[1], [0], [0], [1], [0, 0, 1, 1], [], []>} : vector<16x128xf32>, vector<128x128xf32>, vector<16x128xf32> -> vector<16x128xf32>
    %36 = vector.broadcast %34 : vector<1x128xf32> to vector<16x128xf32>
    %37 = arith.addf %35, %36 : vector<16x128xf32>
    %c0_30 = arith.constant 0 : index
    %c0_31 = arith.constant 0 : index
    %38 = vector.load %arg12[%c0_30, %c0_31] : memref<16x256xf32, #tpu.memory_space<vmem>>, vector<16x128xf32>
    tpu.vector_store %arg12[%c0_30, %c0_31], %37 {strides = array<i32>} : memref<16x256xf32, #tpu.memory_space<vmem>>, vector<16x128xf32>,
    %39 = vector.extract_strided_slice %29 {offsets = [0, 128], sizes = [16, 128], strides = [1, 1]} : vector<16x256xf32> to vector<16x128xf32>
    %c1 = arith.constant 1 : index
    %c0_32 = arith.constant 0 : index
    %c0_33 = arith.constant 0 : index
    %40 = vector.load %arg10[%c1, %c0_32, %c0_33] : memref<2x128x128xf32, #tpu.memory_space<vmem>>, vector<1x128x128xf32>
    %41 = vector.shape_cast %40 : vector<1x128x128xf32> to vector<128x128xf32>
    %c1_34 = arith.constant 1 : index
    %c0_35 = arith.constant 0 : index
    %c0_36 = arith.constant 0 : index
    %42 = vector.load %arg11[%c1_34, %c0_35, %c0_36] : memref<2x1x128xf32, #tpu.memory_space<vmem>>, vector<1x1x128xf32>
    %43 = vector.shape_cast %42 : vector<1x1x128xf32> to vector<1x128xf32>
    %cst_37 = arith.constant dense<0.000000e+00> : vector<16x128xf32>
    %44 = tpu.matmul %39, %41, %cst_37 {dimension_numbers = #tpu.dot_dimension_numbers<[1], [0], [0], [1], [0, 0, 1, 1], [], []>} : vector<16x128xf32>, vector<128x128xf32>, vector<16x128xf32> -> vector<16x128xf32>
    %45 = vector.broadcast %43 : vector<1x128xf32> to vector<16x128xf32>
    %46 = arith.addf %44, %45 : vector<16x128xf32>
    %c0_38 = arith.constant 0 : index
    %c128 = arith.constant 128 : index
    %47 = vector.load %arg12[%c0_38, %c128] : memref<16x256xf32, #tpu.memory_space<vmem>>, vector<16x128xf32>
    tpu.vector_store %arg12[%c0_38, %c128], %46 {strides = array<i32>} : memref<16x256xf32, #tpu.memory_space<vmem>>, vector<16x128xf32>,
    return
  }
  func.func @transform_0(%arg0: i32) -> (i32, i32) {
    %c0_i32 = arith.constant 0 : i32
    %c0_i32_0 = arith.constant 0 : i32
    return %arg0, %c0_i32 : i32, i32
  }
  func.func @transform_1(%arg0: i32) -> (i32, i32) {
    %c0_i32 = arith.constant 0 : i32
    %c0_i32_0 = arith.constant 0 : i32
    %c0_i32_1 = arith.constant 0 : i32
    return %c0_i32, %c0_i32_0 : i32, i32
  }
  func.func @transform_2(%arg0: i32) -> (i32, i32) {
    %c0_i32 = arith.constant 0 : i32
    %c0_i32_0 = arith.constant 0 : i32
    %c0_i32_1 = arith.constant 0 : i32
    return %c0_i32, %c0_i32_0 : i32, i32
  }
  func.func @transform_3(%arg0: i32) -> (i32, i32) {
    %c0_i32 = arith.constant 0 : i32
    %c0_i32_0 = arith.constant 0 : i32
    %c0_i32_1 = arith.constant 0 : i32
    return %c0_i32, %c0_i32_0 : i32, i32
  }
  func.func @transform_4(%arg0: i32) -> (i32, i32) {
    %c0_i32 = arith.constant 0 : i32
    %c0_i32_0 = arith.constant 0 : i32
    %c0_i32_1 = arith.constant 0 : i32
    return %c0_i32, %c0_i32_0 : i32, i32
  }
  func.func @transform_5(%arg0: i32) -> (i32, i32) {
    %c0_i32 = arith.constant 0 : i32
    %c0_i32_0 = arith.constant 0 : i32
    %c0_i32_1 = arith.constant 0 : i32
    return %c0_i32, %c0_i32_0 : i32, i32
  }
  func.func @transform_6(%arg0: i32) -> (i32, i32) {
    %c0_i32 = arith.constant 0 : i32
    %c0_i32_0 = arith.constant 0 : i32
    %c0_i32_1 = arith.constant 0 : i32
    return %c0_i32, %c0_i32_0 : i32, i32
  }
  func.func @transform_7(%arg0: i32) -> (i32, i32) {
    %c0_i32 = arith.constant 0 : i32
    %c0_i32_0 = arith.constant 0 : i32
    %c0_i32_1 = arith.constant 0 : i32
    return %c0_i32, %c0_i32_0 : i32, i32
  }
  func.func @transform_8(%arg0: i32) -> (i32, i32) {
    %c0_i32 = arith.constant 0 : i32
    %c0_i32_0 = arith.constant 0 : i32
    %c0_i32_1 = arith.constant 0 : i32
    return %c0_i32, %c0_i32_0 : i32, i32
  }
  func.func @transform_9(%arg0: i32) -> (i32, i32, i32) {
    %c0_i32 = arith.constant 0 : i32
    %c0_i32_0 = arith.constant 0 : i32
    %c0_i32_1 = arith.constant 0 : i32
    %c0_i32_2 = arith.constant 0 : i32
    return %c0_i32, %c0_i32_0, %c0_i32_1 : i32, i32, i32
  }
  func.func @transform_10(%arg0: i32) -> (i32, i32, i32) {
    %c0_i32 = arith.constant 0 : i32
    %c0_i32_0 = arith.constant 0 : i32
    %c0_i32_1 = arith.constant 0 : i32
    %c0_i32_2 = arith.constant 0 : i32
    return %c0_i32, %c0_i32_0, %c0_i32_1 : i32, i32, i32
  }
  func.func @transform_11(%arg0: i32) -> (i32, i32) {
    %c0_i32 = arith.constant 0 : i32
    %c0_i32_0 = arith.constant 0 : i32
    return %arg0, %c0_i32 : i32, i32
  }
}

module attributes {stable_mosaic.version = 11 : i64} {
  func.func @kernel(%arg0: i32, %arg1: memref<16x32xf32, #tpu.memory_space<vmem>>, %arg2: memref<32x128xf32, #tpu.memory_space<vmem>>, %arg3: memref<1x128xf32, #tpu.memory_space<vmem>>, %arg4: memref<128x128xf32, #tpu.memory_space<vmem>>, %arg5: memref<1x128xf32, #tpu.memory_space<vmem>>, %arg6: memref<128x128xf32, #tpu.memory_space<vmem>>, %arg7: memref<1x128xf32, #tpu.memory_space<vmem>>, %arg8: memref<128x256xf32, #tpu.memory_space<vmem>>, %arg9: memref<1x256xf32, #tpu.memory_space<vmem>>, %arg10: memref<2x128x128xf32, #tpu.memory_space<vmem>>, %arg11: memref<2x1x128xf32, #tpu.memory_space<vmem>>, %arg12: memref<16x256xf32, #tpu.memory_space<vmem>>) attributes {dimension_semantics = [#tpu.dimension_semantics<parallel>], iteration_bounds = array<i64: 2>, scalar_prefetch = 0 : i64, scratch_operands = 0 : i64, tpu.core_type = #tpu.core_type<tc>, window_params = [{transform_indices = @transform_0, window_bounds = array<i64: 16, 32>}, {pipeline_mode = #tpu.pipeline_mode<synchronous>, transform_indices = @transform_1, window_bounds = array<i64: 32, 128>}, {pipeline_mode = #tpu.pipeline_mode<synchronous>, transform_indices = @transform_2, window_bounds = array<i64: 1, 128>}, {pipeline_mode = #tpu.pipeline_mode<synchronous>, transform_indices = @transform_3, window_bounds = array<i64: 128, 128>}, {pipeline_mode = #tpu.pipeline_mode<synchronous>, transform_indices = @transform_4, window_bounds = array<i64: 1, 128>}, {pipeline_mode = #tpu.pipeline_mode<synchronous>, transform_indices = @transform_5, window_bounds = array<i64: 128, 128>}, {pipeline_mode = #tpu.pipeline_mode<synchronous>, transform_indices = @transform_6, window_bounds = array<i64: 1, 128>}, {pipeline_mode = #tpu.pipeline_mode<synchronous>, transform_indices = @transform_7, window_bounds = array<i64: 128, 256>}, {pipeline_mode = #tpu.pipeline_mode<synchronous>, transform_indices = @transform_8, window_bounds = array<i64: 1, 256>}, {pipeline_mode = #tpu.pipeline_mode<synchronous>, transform_indices = @transform_9, window_bounds = array<i64: 2, 128, 128>}, {pipeline_mode = #tpu.pipeline_mode<synchronous>, transform_indices = @transform_10, window_bounds = array<i64: 2, 1, 128>}, {transform_indices = @transform_11, window_bounds = array<i64: 16, 256>}]} {
    %c0 = arith.constant 0 : index
    %c0_0 = arith.constant 0 : index
    %0 = vector.load %arg1[%c0, %c0_0] : memref<16x32xf32, #tpu.memory_space<vmem>>, vector<16x32xf32>
    %c0_1 = arith.constant 0 : index
    %c0_2 = arith.constant 0 : index
    %1 = vector.load %arg2[%c0_1, %c0_2] : memref<32x128xf32, #tpu.memory_space<vmem>>, vector<32x128xf32>
    %c0_3 = arith.constant 0 : index
    %c0_4 = arith.constant 0 : index
    %2 = vector.load %arg3[%c0_3, %c0_4] : memref<1x128xf32, #tpu.memory_space<vmem>>, vector<1x128xf32>
    %cst = arith.constant dense<0.000000e+00> : vector<16x128xf32>
    %3 = tpu.matmul %0, %1, %cst {dimension_numbers = #tpu.dot_dimension_numbers<[1], [0], [0], [1], [0, 0, 1, 1], [], []>} : vector<16x32xf32>, vector<32x128xf32>, vector<16x128xf32> -> vector<16x128xf32>
    %4 = vector.broadcast %2 : vector<1x128xf32> to vector<16x128xf32>
    %5 = arith.addf %3, %4 : vector<16x128xf32>
    %cst_5 = arith.constant 2.000000e-01 : f32
    %6 = vector.broadcast %cst_5 : f32 to vector<16x128xf32>
    %7 = arith.mulf %6, %5 : vector<16x128xf32>
    %8 = arith.maximumf %5, %7 : vector<16x128xf32>
    %c0_6 = arith.constant 0 : index
    %c0_7 = arith.constant 0 : index
    %9 = vector.load %arg4[%c0_6, %c0_7] : memref<128x128xf32, #tpu.memory_space<vmem>>, vector<128x128xf32>
    %c0_8 = arith.constant 0 : index
    %c0_9 = arith.constant 0 : index
    %10 = vector.load %arg5[%c0_8, %c0_9] : memref<1x128xf32, #tpu.memory_space<vmem>>, vector<1x128xf32>
    %cst_10 = arith.constant dense<0.000000e+00> : vector<16x128xf32>
    %11 = tpu.matmul %8, %9, %cst_10 {dimension_numbers = #tpu.dot_dimension_numbers<[1], [0], [0], [1], [0, 0, 1, 1], [], []>} : vector<16x128xf32>, vector<128x128xf32>, vector<16x128xf32> -> vector<16x128xf32>
    %12 = vector.broadcast %10 : vector<1x128xf32> to vector<16x128xf32>
    %13 = arith.addf %11, %12 : vector<16x128xf32>
    %cst_11 = arith.constant 2.000000e-01 : f32
    %14 = vector.broadcast %cst_11 : f32 to vector<16x128xf32>
    %15 = arith.mulf %14, %13 : vector<16x128xf32>
    %16 = arith.maximumf %13, %15 : vector<16x128xf32>
    %c0_12 = arith.constant 0 : index
    %c0_13 = arith.constant 0 : index
    %17 = vector.load %arg6[%c0_12, %c0_13] : memref<128x128xf32, #tpu.memory_space<vmem>>, vector<128x128xf32>
    %c0_14 = arith.constant 0 : index
    %c0_15 = arith.constant 0 : index
    %18 = vector.load %arg7[%c0_14, %c0_15] : memref<1x128xf32, #tpu.memory_space<vmem>>, vector<1x128xf32>
    %cst_16 = arith.constant dense<0.000000e+00> : vector<16x128xf32>
    %19 = tpu.matmul %16, %17, %cst_16 {dimension_numbers = #tpu.dot_dimension_numbers<[1], [0], [0], [1], [0, 0, 1, 1], [], []>} : vector<16x128xf32>, vector<128x128xf32>, vector<16x128xf32> -> vector<16x128xf32>
    %20 = vector.broadcast %18 : vector<1x128xf32> to vector<16x128xf32>
    %21 = arith.addf %19, %20 : vector<16x128xf32>
    %c0_17 = arith.constant 0 : index
    %c0_18 = arith.constant 0 : index
    %22 = vector.load %arg8[%c0_17, %c0_18] : memref<128x256xf32, #tpu.memory_space<vmem>>, vector<128x256xf32>
    %c0_19 = arith.constant 0 : index
    %c0_20 = arith.constant 0 : index
    %23 = vector.load %arg9[%c0_19, %c0_20] : memref<1x256xf32, #tpu.memory_space<vmem>>, vector<1x256xf32>
    %cst_21 = arith.constant dense<0.000000e+00> : vector<16x256xf32>
    %24 = tpu.matmul %21, %22, %cst_21 {dimension_numbers = #tpu.dot_dimension_numbers<[1], [0], [0], [1], [0, 0, 1, 1], [], []>} : vector<16x128xf32>, vector<128x256xf32>, vector<16x256xf32> -> vector<16x256xf32>
    %25 = vector.broadcast %23 : vector<1x256xf32> to vector<16x256xf32>
    %26 = arith.addf %24, %25 : vector<16x256xf32>
    %cst_22 = arith.constant 2.000000e-01 : f32
    %27 = vector.broadcast %cst_22 : f32 to vector<16x256xf32>
    %28 = arith.mulf %27, %26 : vector<16x256xf32>
    %29 = arith.maximumf %26, %28 : vector<16x256xf32>
    %30 = vector.extract_strided_slice %29 {offsets = [0, 0], sizes = [16, 128], strides = [1, 1]} : vector<16x256xf32> to vector<16x128xf32>
    %c0_23 = arith.constant 0 : index
    %c0_24 = arith.constant 0 : index
    %c0_25 = arith.constant 0 : index
    %31 = vector.load %arg10[%c0_23, %c0_24, %c0_25] : memref<2x128x128xf32, #tpu.memory_space<vmem>>, vector<1x128x128xf32>
    %32 = vector.shape_cast %31 : vector<1x128x128xf32> to vector<128x128xf32>
    %c0_26 = arith.constant 0 : index
    %c0_27 = arith.constant 0 : index
    %c0_28 = arith.constant 0 : index
    %33 = vector.load %arg11[%c0_26, %c0_27, %c0_28] : memref<2x1x128xf32, #tpu.memory_space<vmem>>, vector<1x1x128xf32>
    %34 = vector.shape_cast %33 : vector<1x1x128xf32> to vector<1x128xf32>
    %cst_29 = arith.constant dense<0.000000e+00> : vector<16x128xf32>
    %35 = tpu.matmul %30, %32, %cst_29 {dimension_numbers = #tpu.dot_dimension_numbers<[1], [0], [0], [1], [0, 0, 1, 1], [], []>} : vector<16x128xf32>, vector<128x128xf32>, vector<16x128xf32> -> vector<16x128xf32>
    %36 = vector.broadcast %34 : vector<1x128xf32> to vector<16x128xf32>
    %37 = arith.addf %35, %36 : vector<16x128xf32>
    %c0_30 = arith.constant 0 : index
    %c0_31 = arith.constant 0 : index
    %38 = vector.load %arg12[%c0_30, %c0_31] : memref<16x256xf32, #tpu.memory_space<vmem>>, vector<16x128xf32>
    tpu.vector_store %arg12[%c0_30, %c0_31], %37 {strides = array<i32>} : memref<16x256xf32, #tpu.memory_space<vmem>>, vector<16x128xf32>,
    %39 = vector.extract_strided_slice %29 {offsets = [0, 128], sizes = [16, 128], strides = [1, 1]} : vector<16x256xf32> to vector<16x128xf32>
    %c1 = arith.constant 1 : index
    %c0_32 = arith.constant 0 : index
    %c0_33 = arith.constant 0 : index
    %40 = vector.load %arg10[%c1, %c0_32, %c0_33] : memref<2x128x128xf32, #tpu.memory_space<vmem>>, vector<1x128x128xf32>
    %41 = vector.shape_cast %40 : vector<1x128x128xf32> to vector<128x128xf32>
    %c1_34 = arith.constant 1 : index
    %c0_35 = arith.constant 0 : index
    %c0_36 = arith.constant 0 : index
    %42 = vector.load %arg11[%c1_34, %c0_35, %c0_36] : memref<2x1x128xf32, #tpu.memory_space<vmem>>, vector<1x1x128xf32>
    %43 = vector.shape_cast %42 : vector<1x1x128xf32> to vector<1x128xf32>
    %cst_37 = arith.constant dense<0.000000e+00> : vector<16x128xf32>
    %44 = tpu.matmul %39, %41, %cst_37 {dimension_numbers = #tpu.dot_dimension_numbers<[1], [0], [0], [1], [0, 0, 1, 1], [], []>} : vector<16x128xf32>, vector<128x128xf32>, vector<16x128xf32> -> vector<16x128xf32>
    %45 = vector.broadcast %43 : vector<1x128xf32> to vector<16x128xf32>
    %46 = arith.addf %44, %45 : vector<16x128xf32>
    %c0_38 = arith.constant 0 : index
    %c128 = arith.constant 128 : index
    %47 = vector.load %arg12[%c0_38, %c128] : memref<16x256xf32, #tpu.memory_space<vmem>>, vector<16x128xf32>
    tpu.vector_store %arg12[%c0_38, %c128], %46 {strides = array<i32>} : memref<16x256xf32, #tpu.memory_space<vmem>>, vector<16x128xf32>,
    return
  }
  func.func @transform_0(%arg0: i32) -> (i32, i32) {
    %c0_i32 = arith.constant 0 : i32
    %c0_i32_0 = arith.constant 0 : i32
    return %arg0, %c0_i32 : i32, i32
  }
  func.func @transform_1(%arg0: i32) -> (i32, i32) {
    %c0_i32 = arith.constant 0 : i32
    %c0_i32_0 = arith.constant 0 : i32
    %c0_i32_1 = arith.constant 0 : i32
    return %c0_i32, %c0_i32_0 : i32, i32
  }
  func.func @transform_2(%arg0: i32) -> (i32, i32) {
    %c0_i32 = arith.constant 0 : i32
    %c0_i32_0 = arith.constant 0 : i32
    %c0_i32_1 = arith.constant 0 : i32
    return %c0_i32, %c0_i32_0 : i32, i32
  }
  func.func @transform_3(%arg0: i32) -> (i32, i32) {
    %c0_i32 = arith.constant 0 : i32
    %c0_i32_0 = arith.constant 0 : i32
    %c0_i32_1 = arith.constant 0 : i32
    return %c0_i32, %c0_i32_0 : i32, i32
  }
  func.func @transform_4(%arg0: i32) -> (i32, i32) {
    %c0_i32 = arith.constant 0 : i32
    %c0_i32_0 = arith.constant 0 : i32
    %c0_i32_1 = arith.constant 0 : i32
    return %c0_i32, %c0_i32_0 : i32, i32
  }
  func.func @transform_5(%arg0: i32) -> (i32, i32) {
    %c0_i32 = arith.constant 0 : i32
    %c0_i32_0 = arith.constant 0 : i32
    %c0_i32_1 = arith.constant 0 : i32
    return %c0_i32, %c0_i32_0 : i32, i32
  }
  func.func @transform_6(%arg0: i32) -> (i32, i32) {
    %c0_i32 = arith.constant 0 : i32
    %c0_i32_0 = arith.constant 0 : i32
    %c0_i32_1 = arith.constant 0 : i32
    return %c0_i32, %c0_i32_0 : i32, i32
  }
  func.func @transform_7(%arg0: i32) -> (i32, i32) {
    %c0_i32 = arith.constant 0 : i32
    %c0_i32_0 = arith.constant 0 : i32
    %c0_i32_1 = arith.constant 0 : i32
    return %c0_i32, %c0_i32_0 : i32, i32
  }
  func.func @transform_8(%arg0: i32) -> (i32, i32) {
    %c0_i32 = arith.constant 0 : i32
    %c0_i32_0 = arith.constant 0 : i32
    %c0_i32_1 = arith.constant 0 : i32
    return %c0_i32, %c0_i32_0 : i32, i32
  }
  func.func @transform_9(%arg0: i32) -> (i32, i32, i32) {
    %c0_i32 = arith.constant 0 : i32
    %c0_i32_0 = arith.constant 0 : i32
    %c0_i32_1 = arith.constant 0 : i32
    %c0_i32_2 = arith.constant 0 : i32
    return %c0_i32, %c0_i32_0, %c0_i32_1 : i32, i32, i32
  }
  func.func @transform_10(%arg0: i32) -> (i32, i32, i32) {
    %c0_i32 = arith.constant 0 : i32
    %c0_i32_0 = arith.constant 0 : i32
    %c0_i32_1 = arith.constant 0 : i32
    %c0_i32_2 = arith.constant 0 : i32
    return %c0_i32, %c0_i32_0, %c0_i32_1 : i32, i32, i32
  }
  func.func @transform_11(%arg0: i32) -> (i32, i32) {
    %c0_i32 = arith.constant 0 : i32
    %c0_i32_0 = arith.constant 0 : i32
    return %arg0, %c0_i32 : i32, i32
  }
}

</mosaic_0001>

<bundles_post_ra>
// kernel: tpu_custom_call.1
= control target key start
LH: loop header
LB: loop body
LE: loop exit
PB: predicated region body
PF: predicated region fallthrough
CT: control target
= control target key end

     0   :  { %s2192_s0 = inlined_call_operand.hbm [shape: f32[32,32], index: 0, kind: input, shape index: {}]   ;;  %s2193_s1 = inlined_call_operand.hbm [shape: f32[32,128], index: 1, kind: input, shape index: {}]   ;;  %s2194_s2 = inlined_call_operand.vmem [shape: f32[1,128], index: 2, kind: input, shape index: {}]   ;;  %s2195_s3 = inlined_call_operand.hbm [shape: f32[128,128], index: 3, kind: input, shape index: {}]   ;;  %s2196_s4 = inlined_call_operand.vmem [shape: f32[1,128], index: 4, kind: input, shape index: {}]   ;;  %s2197_s5 = inlined_call_operand.hbm [shape: f32[128,128], index: 5, kind: input, shape index: {}]   ;;  %s2198_s6 = inlined_call_operand.vmem [shape: f32[1,128], index: 6, kind: input, shape index: {}]   ;;  %s2199_s7 = inlined_call_operand.hbm [shape: f32[128,256], index: 7, kind: input, shape index: {}]   ;;  %s2200_s8 = inlined_call_operand.vmem [shape: f32[1,256], index: 8, kind: input, shape index: {}]   ;;  %s2201_s9 = inlined_call_operand.hbm [shape: f32[2,128,128], index: 9, kind: input, shape index: {}]   ;;  %s2202_s10 = inlined_call_operand.vmem [shape: f32[2,1,128], index: 10, kind: input, shape index: {}]   ;;  %s2203_s11 = inlined_call_operand.hbm [shape: f32[32,256], index: 11, kind: output, shape index: {}]  }
   0x1   :  { %2210 = sst [smem:[#allocation19_spill]] %s2193_s1 }
   0x2   :  { %2211 = sst [smem:[#allocation20_spill]] %s2195_s3 }
   0x3   :  { %2212 = sst [smem:[#allocation21_spill]] %s2197_s5 }
   0x4   :  { %2213 = sst [smem:[#allocation22_spill]] %s2199_s7 }
   0x5   :  { %2214 = sst [smem:[#allocation23_spill]] %s2201_s9 }
   0x6   :  { %16 = vsyncpa [#allocation3], 0 }
   0x7   :  { %18 = vsyncpa [#allocation3 + $0x1], 0 }
   0x8   :  { %19 = vsyncpa [#allocation6], 0 }
   0x9   :  { %20 = vsyncpa [#allocation9], 0 }
   0xa   :  { %21 = vsyncpa [#allocation12], 0 }
   0xb   :  { %22 = vsyncpa [#allocation4], 0 }
   0xc   :  { %24 = vsyncpa [#allocation4 + $0x1], 0  ;;  %s1925_s17 = smov 0   ;;  %s1927_s18 = smov 0  }
   0xd   :  { %s1929_s19 = smov 0   ;;  %s1931_s20 = smov 0  }
   0xe LB: > { %s1851_s21 = smov [#allocation5]   ;;  %s1946_s23 = sadd.s32 4294967295, %s1849_s20   ;;  %s1849_s20 = sphi %s1931_s20, %s2243_s20   ;;  %s1845_s19 = sphi %s1929_s19, %s2242_s19   ;;  %s1841_s18 = sphi %s1927_s18, %s2241_s18   ;;  %s1837_s17 = sphi %s1925_s17, %s2240_s17  }
   0xf   : > { %s309_s22 = sshll.u32 %s1851_s21, 4  ;;  %p1247_p0 = scmp.ge.s32.totalorder %s1849_s20, 1  ;;  %s310_s22 = int_to_ptr.vmem [resolvable:$true] %s309_s22 }
  0x10   : > { %p2206_p1 = scmp.eq.s32.totalorder %s1946_s23, 0  ;;  %p297_p2 = scmp.lt.s32.totalorder %s1849_s20, 3 }
  0x11   : > { %s1852_s25 = smov [#allocation8]   ;;  %s1853_s28 = smov [#allocation7]  }
  0x12   : > { %p1951_p3 = pnand %p1247_p0, %p297_p2  ;;  %s341_s26 = sshll.u32 %s1852_s25, 4  ;;  %s1964_s26 = int_to_ptr.vmem [resolvable:$true] %s341_s26 }
  0x13   : > { %s325_s29 = sshll.u32 %s1853_s28, 4  ;;  %s1626_s12 = scalar_lea.vmem %s310_s22, 512  ;;  %s1966_s29 = int_to_ptr.vmem [resolvable:$true] %s325_s29 }
  0x14   : > { %s2215_s24 = scalar_select %p1951_p3, 1, 0 }
  0x15   : > { %p1535_p5 = pneg %p1951_p3  ;;  %p1627_p8 = scmp.ne.s32.totalorder %s310_s22, %s1626_s12 }
  0x16   : > { %p1634_p11 = scmp.lt.s32.totalorder %s310_s22, %s310_s22  ;;  %p1635_p12 = scmp.lt.s32.totalorder %s1626_s12, %s1626_s12 }
  0x17   : > { %p1960_p6 = pnand %p1535_p5, %p2206_p1 }
  0x18   : > { %p1636_p13 = por %p1635_p12, %p1634_p11 }
  0x19   : > { %p1970_p7 = pneg %p1960_p6 }
  0x1b   : > { %p1629_p9 = pnand %p1627_p8, %p1970_p7 }
  0x1d   : > { %p1630_p10 = pneg %p1629_p9 }
  0x1f   : > { %p1637_p0 = pnand %p1636_p13, %p1630_p10 }
  0x21   : > { %1640 = shalt.err (!%p1637_p0)
}
  0x22   : > { %s2204_s13 = smov 128   ;;  %s2205_s14 = smov 8  }
  0x23   : > { %s2218_s1 = sld [smem:[#allocation19_spill]]  ;;  %s1652_s21 = scalar_lea.vmem %s1964_s26, 2048 }
  0x24   : > { %p1653_p2 = scmp.ne.s32.totalorder %s1964_s26, %s1652_s21  ;;  %p1660_p9 = scmp.lt.s32.totalorder %s1964_s26, %s1964_s26 }
  0x25   : > { %p1661_p10 = scmp.lt.s32.totalorder %s1652_s21, %s1652_s21 }
  0x26   : > { %p1655_p5 = pnand %p1653_p2, %p1970_p7 }
  0x27   : > { %p1662_p11 = por %p1661_p10, %p1660_p9 }
  0x28   : > { %p1656_p8 = pneg %p1655_p5 }
  0x29   : > { %1538 = dma.hbm_to_vmem [thread:$0]  (!%p1960_p6), %s2218_s1, 512, %s310_s22, [#allocation6], %s2204_s13, %s2204_s13, %s2205_s14  }
  0x2a   : > { %p1663_p12 = pnand %p1662_p11, %p1656_p8 }
  0x2c   : > { %1666 = shalt.err (!%p1663_p12)
}
  0x2d   : > { %s2219_s5 = sld [smem:[#allocation21_spill]]  ;;  %s1678_s22 = scalar_lea.vmem %s1966_s29, 2048 }
  0x2e   : > { %p1679_p13 = scmp.ne.s32.totalorder %s1966_s29, %s1678_s22  ;;  %p1686_p5 = scmp.lt.s32.totalorder %s1966_s29, %s1966_s29 }
  0x2f   : > { %p1687_p8 = scmp.lt.s32.totalorder %s1678_s22, %s1678_s22 }
  0x30   : > { %p1681_p0 = pnand %p1679_p13, %p1970_p7 }
  0x31   : > { %p1688_p9 = por %p1687_p8, %p1686_p5 }
  0x32   : > { %p1682_p2 = pneg %p1681_p0 }
  0x33   : > { %1544 = dma.hbm_to_vmem [thread:$0]  (!%p1960_p6), %s2219_s5, 2048, %s1964_s26, [#allocation9], %s2204_s13, %s2204_s13, %s2205_s14  }
  0x34   : > { %p1689_p10 = pnand %p1688_p9, %p1682_p2 }
  0x36   : > { %1692 = shalt.err (!%p1689_p10)
}
  0x37   : > { %s2220_s3 = sld [smem:[#allocation20_spill]]  ;;  %s1856_s26 = smov [#allocation10]  }
  0x38   : > { %s357_s16 = sshll.u32 %s1856_s26, 4  ;;  %s358_s16 = int_to_ptr.vmem [resolvable:$true] %s357_s16 }
  0x39   : > { %s1704_s21 = scalar_lea.vmem %s358_s16, 4096  ;;  %p1712_p0 = scmp.lt.s32.totalorder %s358_s16, %s358_s16 }
  0x3a   : > { %p1705_p11 = scmp.ne.s32.totalorder %s358_s16, %s1704_s21  ;;  %p1713_p2 = scmp.lt.s32.totalorder %s1704_s21, %s1704_s21 }
  0x3c   : > { %p1707_p12 = pnand %p1705_p11, %p1970_p7  ;;  %p1714_p5 = por %p1713_p2, %p1712_p0 }
  0x3d   : > { %1541 = dma.hbm_to_vmem [thread:$0]  (!%p1960_p6), %s2220_s3, 2048, %s1966_s29, [#allocation6], %s2204_s13, %s2204_s13, %s2205_s14  }
  0x3e   : > { %p1708_p13 = pneg %p1707_p12 }
  0x40   : > { %p1715_p8 = pnand %p1714_p5, %p1708_p13 }
  0x42   : > { %1718 = shalt.err (!%p1715_p8)
}
  0x43   : > { %s1857_s25 = smov 256   ;;  %s1858_s28 = smov 16  }
  0x44   : > { %s2221_s7 = sld [smem:[#allocation22_spill]]  ;;  %s1859_s12 = smov [#allocation11]  }
  0x45   : > { %s373_s15 = sshll.u32 %s1859_s12, 4  ;;  %s374_s15 = int_to_ptr.vmem [resolvable:$true] %s373_s15 }
  0x46   : > { %s1730_s26 = scalar_lea.vmem %s374_s15, 4096  ;;  %p1738_p12 = scmp.lt.s32.totalorder %s374_s15, %s374_s15 }
  0x47   : > { %p1731_p9 = scmp.ne.s32.totalorder %s374_s15, %s1730_s26  ;;  %p1739_p13 = scmp.lt.s32.totalorder %s1730_s26, %s1730_s26 }
  0x49   : > { %p1733_p10 = pnand %p1731_p9, %p1970_p7  ;;  %p1740_p0 = por %p1739_p13, %p1738_p12 }
  0x4a   : > { %1547 = dma.hbm_to_vmem [thread:$0]  (!%p1960_p6), %s2221_s7, 4096, %s358_s16, [#allocation9], %s1857_s25, %s1857_s25, %s1858_s28  }
  0x4b   : > { %p1734_p11 = pneg %p1733_p10 }
  0x4d   : > { %p1741_p2 = pnand %p1740_p0, %p1734_p11 }
  0x4f   : > { %1744 = shalt.err (!%p1741_p2)
}
  0x50   : > { %s2222_s9 = sld [smem:[#allocation23_spill]]  ;;  %s1246_s27 = sadd.s32 4294967294, %s1849_s20  }
  0x51   : > { %s2033_s30 = sadd.s32 1, %s1849_s20   ;;  %s37_s25 = sadd.s32 1, %s1845_s19 }
  0x52   : > { %s34_s28 = ssub.s32 %s1849_s20, %s2033_s30  ;;  %p44_p7 = scmp.ne.s32.totalorder %s1845_s19, %s1841_s18 }
  0x53   : > { %p35_p5 = scmp.eq.s32.totalorder %s34_s28, 0  ;;  %p45_p8 = scmp.eq.s32.totalorder %s1849_s20, 0 }
  0x54   : > { %p50_p9 = scmp.ne.s32.totalorder %s1841_s18, %s1837_s17  ;;  %p284_p10 = scmp.eq.s32.totalorder %s1946_s23, 1 }
  0x55   : > { %s2045_s22 = scalar_select %p35_p5, %s1845_s19, %s37_s25  }
  0x56   : > { %1550 = dma.hbm_to_vmem [thread:$0]  (!%p1960_p6), %s2222_s9, 4096, %s374_s15, [#allocation12], %s2204_s13, %s2204_s13, %s2205_s14  }
  0x57   : > { %p46_p11 = por %p45_p8, %p44_p7  ;;  %p2049_p12 = por %p2206_p1, %p50_p9 }
  0x58   : > { %p2053_p6 = por %p284_p10, %p44_p7  ;;  %p290_p13 = scmp.eq.s32.totalorder %s1246_s27, 1 }
  0x59   : > { %s2223_s29 = scalar_select %p2049_p12, 1, 0 }
  0x5a   : > { %s2224_s12 = scalar_select %p2053_p6, 1, 0 }
  0x5b   : > { %p1564_p0 = scmp.lt.s32.totalorder %s1849_s20, 2  ;;  %s390_s15 = sand.u32 1, %s1845_s19  }
  0x5c   : > { %p2059_p2 = por %p290_p13, %p50_p9  ;;  %s1254_s21 = sshll.u32 %s390_s15, 4 }
  0x5d   : > { %s1279_s16 = sshll.u32 %s1849_s20, 8  ;;  %s394_s14 = scalar_lea.vmem [#allocation2], %s1254_s21 }
  0x5e   : > { %s2225_s26 = scalar_select %p2059_p2, 1, 0 }
  0x5f   : > { %s2067_s13 = scalar_lea.hbm %s2192_s0, %s1279_s16  ;;  %s401_s1 = sshll.u32 %s394_s14, 4  ;;  %s2073_s1 = int_to_ptr.vmem [resolvable:$true] %s401_s1 }
  0x60   : > { %p2069_p7 = pnand %p1564_p0, %p46_p11  ;;  %s2075_s3 = scalar_lea.sflag [#allocation3], %s390_s15 }
  0x61   : > { %s1745_s5 = scalar_lea.hbm %s2067_s13, 256  ;;  %s1750_s21 = scalar_lea.hbm %s2192_s0, 512 }
  0x62   : > { %p1746_p5 = scmp.ne.s32.totalorder %s2067_s13, %s1745_s5  ;;  %p1747_p8 = pneg %p2069_p7 }
  0x63   : > { %p1751_p11 = scmp.lt.s32.totalorder %s2067_s13, %s2192_s0  ;;  %p1752_p13 = scmp.lt.s32.totalorder %s1750_s21, %s1745_s5 }
  0x64   : > { %p1748_p9 = pnand %p1747_p8, %p1746_p5 }
  0x65   : > { %p1753_p0 = por %p1752_p13, %p1751_p11 }
  0x66   : > { %p1749_p10 = pneg %p1748_p9 }
  0x68   : > { %p1754_p4 = pnand %p1753_p0, %p1749_p10 }
  0x6a   : > { %1757 = shalt.err (!%p1754_p4)
}
  0x6b   : > { %s1758_s15 = scalar_lea.vmem %s2073_s1, 256  ;;  %s1860_s7 = smov [#allocation2]  }
  0x6c   : > { %p1759_p1 = scmp.ne.s32.totalorder %s2073_s1, %s1758_s15  ;;  %s1763_s9 = sshll.u32 %s1860_s7, 4  ;;  %s1764_s9 = int_to_ptr.vmem [resolvable:$false] %s1763_s9 }
  0x6d   : > { %s1765_s16 = scalar_lea.vmem %s1764_s9, 512  ;;  %p1766_p9 = scmp.lt.s32.totalorder %s2073_s1, %s1764_s9 }
  0x6e   : > { %p1761_p2 = pnand %p1759_p1, %p1747_p8  ;;  %p1767_p6 = scmp.lt.s32.totalorder %s1765_s16, %s1758_s15 }
  0x70   : > { %p1762_p5 = pneg %p1761_p2  ;;  %p1768_p12 = por %p1767_p6, %p1766_p9 }
  0x72   : > { %p1769_p3 = pnand %p1768_p12, %p1762_p5 }
  0x74   : > { %1772 = shalt.err (!%p1769_p3)
}
  0x75   : > { %s2227_s5 = smov 8   ;;  %s2228_s25 = smov 128  }
  0x76   : > { %1554 = dma.hbm_to_vmem [thread:$0]  (!%p2069_p7), %s2067_s13, 256, %s2073_s1, %s2075_s3, %s2228_s25, %s2228_s25, %s2227_s5  }
  0x77   : > { %p2229_p1 = scmp.ne.s32.totalorder %s2215_s24, 0 }
  0x78   : > { %s2102_s7 = sand.u32 (!%p2229_p1), 1, %s1841_s18   ;;  %p2230_p3 = scmp.ne.s32.totalorder (!%p2229_p1), %s2223_s29, 0 }
  0x79   : > { %413 = sbr.rel (%p2229_p1) target bundleno = 1163 (0x48b), region = 64  ;;  %s1258_s9 = sshll.u32 (!%p2229_p1), %s2102_s7, 4 }
  0x7a   : > { %s416_s21 = scalar_lea.sflag (!%p2229_p1), [#allocation3], %s2102_s7  ;;  %s419_s14 = scalar_lea.vmem (!%p2229_p1), [#allocation2], %s1258_s9 }
  0x7e   : > { %1816 = dma.done.wait (%p2230_p3), %s416_s21, 256  }
  0x7f   : > { %1818 = vsyncadd (%p2230_p3), %s416_s21, 4294967040  ;;  %p2231_p4 = scmp.eq.s32.totalorder %s1946_s23, 0 }
  0x81   : > { %1820 = dma.done.wait (%p2231_p4), [#allocation6], 2560   ;;  %p2232_p12 = pmov %p2231_p4 }
  0x82   : > { %p2233_p6 = pmov %p2231_p4 }
  0x83   : > { %1822 = vsyncadd (%p2232_p12), [#allocation6], 4294964736 }
  0x84   : > { %1824 = dma.done.wait (%p2233_p6), [#allocation9], 6144   ;;  %p2234_p2 = pmov %p2231_p4 }
  0x86   : > { %1826 = vsyncadd (%p2234_p2), [#allocation9], 4294961152  ;;  %p2235_p7 = pmov %p2234_p2 }
  0x87   : > { %p2236_p8 = pmov %p2234_p2 }
  0x88   : > { %1828 = dma.done.wait (%p2235_p7), [#allocation12], 4096  }
  0x89   : > { %1830 = vsyncadd (%p2236_p8), [#allocation12], 4294963200  ;;  %vm493_vm0 = vcmask 261120   ;;  %v485_v0 = vld [vmem:[#allocation5 + $0x18] sm:$0xff]  ;;  %v484_v1 = vld [vmem:[#allocation5 + $0x10] sm:$0xff]  ;;  %s1264_s16 = sshll.u32 %s2102_s7, 5 }
  0x8a   : > { %1360 = vmatprep.subr.mxu0 %v485_v0  ;;  %v480_v2 = vld [vmem:[%s419_s14] sm:$0xff]  ;;  %v483_v3 = vld [vmem:[#allocation5 + $0x8] sm:$0xff]  ;;  %v594_v4 = vld [vmem:[#allocation7 + $0x78] sm:$0xff]  ;;  %s477_s9 = scalar_lea.vmem [#allocation13], %s1264_s16  ;;  %s1281_s3 = sshll.u32 %s1946_s23, 9 }
  0x8b   : > { %1361 = vmatpush3.msra.mxu0 %v485_v0  ;;  %1368 = vmatprep.mubr.msk.f32.mxu0 %vm493_vm0, %v480_v2  ;;  %v593_v5 = vld [vmem:[#allocation7 + $0x70] sm:$0xff]  ;;  %v482_v6 = vld [vmem:[#allocation5] sm:$0xff]  ;;  %v592_v7 = vld [vmem:[#allocation7 + $0x68] sm:$0xff]  ;;  %s1125_s21 = sshll.u32 %s477_s9, 4  ;;  %s2149_s29 = scalar_lea.hbm %s2203_s11, %s1281_s3  ;;  %s2144_s21 = int_to_ptr.vmem [resolvable:$true] %s1125_s21 }
  0x8c   : > { %1362 = vmatprep.subr.mxu0 %v484_v1  ;;  %1371 = vmatprep.subr.mxu1 %v594_v4  ;;  %v481_v8 = vld [vmem:[%s419_s14 + $0x8] sm:$0xff]  ;;  %v591_v9 = vld [vmem:[#allocation7 + $0x60] sm:$0xff]  ;;  %v589_v11 = vld [vmem:[#allocation7 + $0x50] sm:$0xff]  ;;  %s1111_s23 = scalar_lea.sflag [#allocation4], %s2102_s7  ;;  %s1773_s27 = scalar_lea.vmem %s2144_s21, 512 }
  0x8d   : > { %1363 = vmatpush3.msra.mxu0 %v484_v1  ;;  %1372 = vmatpush3.msra.mxu1 %v594_v4  ;;  %v590_v10 = vld [vmem:[#allocation7 + $0x58] sm:$0xff]  ;;  %v588_v12 = vld [vmem:[#allocation7 + $0x48] sm:$0xff]  ;;  %v587_v13 = vld [vmem:[#allocation7 + $0x40] sm:$0xff]  ;;  %p1774_p10 = scmp.ne.s32.totalorder %s2144_s21, %s1773_s27  ;;  %p2237_p11 = scmp.ne.s32.totalorder %s2224_s12, 0 }
  0x8e   : > { %1364 = vmatprep.subr.mxu0 %v483_v3  ;;  %1373 = vmatprep.subr.mxu1 %v593_v5  ;;  %v586_v14 = vld [vmem:[#allocation7 + $0x38] sm:$0xff]  ;;  %v585_v15 = vld [vmem:[#allocation7 + $0x30] sm:$0xff]  ;;  %v584_v16 = vld [vmem:[#allocation7 + $0x28] sm:$0xff]  ;;  %s1862_s28 = smov [#allocation13]  }
  0x8f   : > { %1365 = vmatpush3.msra.mxu0 %v483_v3  ;;  %1374 = vmatpush3.msra.mxu1 %v593_v5  ;;  %v583_v17 = vld [vmem:[#allocation7 + $0x20] sm:$0xff]  ;;  %v582_v18 = vld [vmem:[#allocation7 + $0x18] sm:$0xff]  ;;  %v581_v19 = vld [vmem:[#allocation7 + $0x10] sm:$0xff]  ;;  %p1775_p13 = pnand %p1774_p10, %p2237_p11  ;;  %s1777_s15 = sshll.u32 %s1862_s28, 4  ;;  %s1778_s15 = int_to_ptr.vmem [resolvable:$false] %s1777_s15 }
  0x90   : > { %1366 = vmatprep.subr.mxu0 %v482_v6  ;;  %1375 = vmatprep.subr.mxu1 %v592_v7  ;;  %v580_v20 = vld [vmem:[#allocation7 + $0x8] sm:$0xff]  ;;  %v579_v21 = vld [vmem:[#allocation7] sm:$0xff]  ;;  %v696_v22 = vld [vmem:[#allocation8 + $0x78] sm:$0xff]  ;;  %s1779_s16 = scalar_lea.vmem %s1778_s15, 1024  ;;  %p1780_p5 = scmp.lt.s32.totalorder %s2144_s21, %s1778_s15 }
  0x91   : > { %1367 = vmatpush3.msra.mxu0 %v482_v6  ;;  %1376 = vmatpush3.msra.mxu1 %v592_v7  ;;  %v695_v23 = vld [vmem:[#allocation8 + $0x70] sm:$0xff]  ;;  %v694_v24 = vld [vmem:[#allocation8 + $0x68] sm:$0xff]  ;;  %v693_v25 = vld [vmem:[#allocation8 + $0x60] sm:$0xff]  ;;  %p1776_p0 = pneg %p1775_p13  ;;  %p1781_p9 = scmp.lt.s32.totalorder %s1779_s16, %s1773_s27 }
  0x92   : > { %1369 = vmatmul.mubr.msk.f32.vlgmr.msra.gmra.mxu0 %vm493_vm0, %v481_v8  ;;  %1377 = vmatprep.subr.mxu1 %v591_v9  ;;  %v692_v26 = vld [vmem:[#allocation8 + $0x58] sm:$0xff]  ;;  %v691_v27 = vld [vmem:[#allocation8 + $0x50] sm:$0xff]  ;;  %v690_v28 = vld [vmem:[#allocation8 + $0x48] sm:$0xff] }
  0x93   : > { %1378 = vmatpush3.msra.mxu1 %v591_v9  ;;  %1406 = vmatprep.subr.mxu0 %v696_v22  ;;  %v689_v29 = vld [vmem:[#allocation8 + $0x40] sm:$0xff]  ;;  %v688_v30 = vld [vmem:[#allocation8 + $0x38] sm:$0xff]  ;;  %v687_v31 = vld [vmem:[#allocation8 + $0x30] sm:$0xff]  ;;  %p1782_p1 = por %p1781_p9, %p1780_p5 }
  0x94   : > { %1379 = vmatprep.subr.mxu1 %v590_v10  ;;  %1407 = vmatpush3.msra.mxu0 %v696_v22  ;;  %v686_v32 = vld [vmem:[#allocation8 + $0x28] sm:$0xff]  ;;  %v1265_v33 = vld [vmem:[%s2194_s2] ss:$0 sm:$0xff]  ;;  %v684_v43 = vld [vmem:[#allocation8 + $0x18] sm:$0xff] }
  0x95   : > { %1380 = vmatpush3.msra.mxu1 %v590_v10  ;;  %1408 = vmatprep.subr.mxu0 %v695_v23  ;;  %v685_v42 = vld [vmem:[#allocation8 + $0x20] sm:$0xff]  ;;  %v683_v44 = vld [vmem:[#allocation8 + $0x10] sm:$0xff]  ;;  %v682_v45 = vld [vmem:[#allocation8 + $0x8] sm:$0xff]  ;;  %p1783_p3 = pnand %p1782_p1, %p1776_p0 }
  0x96   : > { %1381 = vmatprep.subr.mxu1 %v589_v11  ;;  %1409 = vmatpush3.msra.mxu0 %v695_v23  ;;  %v681_v46 = vld [vmem:[#allocation8] sm:$0xff]  ;;  %v810_v47 = vld [vmem:[#allocation10 + $0xf8] sm:$0xff]  ;;  %v809_v48 = vld [vmem:[#allocation10 + $0xf0] sm:$0xff] }
  0x97   : > { %1382 = vmatpush3.msra.mxu1 %v589_v11  ;;  %1410 = vmatprep.subr.mxu0 %v694_v24  ;;  %v808_v49 = vld [vmem:[#allocation10 + $0xe8] sm:$0xff]  ;;  %v807_v50 = vld [vmem:[#allocation10 + $0xe0] sm:$0xff]  ;;  %v806_v51 = vld [vmem:[#allocation10 + $0xd8] sm:$0xff] }
  0x98   : > { %1383 = vmatprep.subr.mxu1 %v588_v12  ;;  %1411 = vmatpush3.msra.mxu0 %v694_v24  ;;  %v805_v52 = vld [vmem:[#allocation10 + $0xd0] sm:$0xff]  ;;  %v804_v53 = vld [vmem:[#allocation10 + $0xc8] sm:$0xff]  ;;  %v803_v54 = vld [vmem:[#allocation10 + $0xc0] sm:$0xff]  ;;  %v1861_v24 = vmov 0.0  }
  0x99   : > { %1384 = vmatpush3.msra.mxu1 %v588_v12  ;;  %1412 = vmatprep.subr.mxu0 %v693_v25  ;;  %v802_v55 = vld [vmem:[#allocation10 + $0xb8] sm:$0xff]  ;;  %v801_v56 = vld [vmem:[#allocation10 + $0xb0] sm:$0xff]  ;;  %v800_v57 = vld [vmem:[#allocation10 + $0xa8] sm:$0xff] }
  0x9a   : > { %1385 = vmatprep.subr.mxu1 %v587_v13  ;;  %1413 = vmatpush3.msra.mxu0 %v693_v25  ;;  %v799_v58 = vld [vmem:[#allocation10 + $0xa0] sm:$0xff]  ;;  %v798_v59 = vld [vmem:[#allocation10 + $0x98] sm:$0xff]  ;;  %v797_v60 = vld [vmem:[#allocation10 + $0x90] sm:$0xff] }
  0x9b   : > { %1386 = vmatpush3.msra.mxu1 %v587_v13  ;;  %1414 = vmatprep.subr.mxu0 %v692_v26  ;;  %v796_v61 = vld [vmem:[#allocation10 + $0x88] sm:$0xff]  ;;  %v795_v62 = vld [vmem:[#allocation10 + $0x80] sm:$0xff]  ;;  %v794_v63 = vld [vmem:[#allocation10 + $0x78] sm:$0xff] }
  0x9c   : > { %1387 = vmatprep.subr.mxu1 %v586_v14  ;;  %1415 = vmatpush3.msra.mxu0 %v692_v26  ;;  %v793_v0 = vld [vmem:[#allocation10 + $0x70] sm:$0xff]  ;;  %v792_v1 = vld [vmem:[#allocation10 + $0x68] sm:$0xff]  ;;  %v791_v2 = vld [vmem:[#allocation10 + $0x60] sm:$0xff] }
  0x9d   : > { %1388 = vmatpush3.msra.mxu1 %v586_v14  ;;  %1416 = vmatprep.subr.mxu0 %v691_v27  ;;  %v790_v3 = vld [vmem:[#allocation10 + $0x58] sm:$0xff]  ;;  %v789_v4 = vld [vmem:[#allocation10 + $0x50] sm:$0xff]  ;;  %v788_v5 = vld [vmem:[#allocation10 + $0x48] sm:$0xff] }
  0x9e   : > { %1389 = vmatprep.subr.mxu1 %v585_v15  ;;  %1417 = vmatpush3.msra.mxu0 %v691_v27  ;;  %v787_v6 = vld [vmem:[#allocation10 + $0x40] sm:$0xff]  ;;  %v786_v7 = vld [vmem:[#allocation10 + $0x38] sm:$0xff]  ;;  %v785_v8 = vld [vmem:[#allocation10 + $0x30] sm:$0xff] }
  0x9f   : > { %1390 = vmatpush3.msra.mxu1 %v585_v15  ;;  %1418 = vmatprep.subr.mxu0 %v690_v28  ;;  %v784_v9 = vld [vmem:[#allocation10 + $0x28] sm:$0xff]  ;;  %v1268_v10 = vld [vmem:[%s2196_s4] ss:$0 sm:$0xff]  ;;  %v923_v25 = vld [vmem:[#allocation11 + $0x78] sm:$0xff] }
  0xa0   : > { %1391 = vmatprep.subr.mxu1 %v584_v16  ;;  %1419 = vmatpush3.msra.mxu0 %v690_v28  ;;  %v780_v22 = vld [vmem:[#allocation10 + $0x8] sm:$0xff]  ;;  %v779_v23 = vld [vmem:[#allocation10] sm:$0xff]  ;;  %v922_v26 = vld [vmem:[#allocation11 + $0x70] sm:$0xff] }
  0xa1   : > { %1392 = vmatpush3.msra.mxu1 %v584_v16  ;;  %1420 = vmatprep.subr.mxu0 %v689_v29  ;;  %v1024_v27 = vld [vmem:[#allocation11 + $0xf8] sm:$0xff]  ;;  %v921_v28 = vld [vmem:[#allocation11 + $0x68] sm:$0xff] }
  0xa2   : > { %1393 = vmatprep.subr.mxu1 %v583_v17  ;;  %1421 = vmatpush3.msra.mxu0 %v689_v29  ;;  %v920_v29 = vld [vmem:[#allocation11 + $0x60] sm:$0xff] }
  0xa3   : > { %1394 = vmatpush3.msra.mxu1 %v583_v17  ;;  %1422 = vmatprep.subr.mxu0 %v688_v30 }
  0xa4   : > { %1395 = vmatprep.subr.mxu1 %v582_v18  ;;  %1423 = vmatpush3.msra.mxu0 %v688_v30  ;;  %v919_v30 = vld [vmem:[#allocation11 + $0x58] sm:$0xff] }
  0xa5   : > { %1396 = vmatpush3.msra.mxu1 %v582_v18  ;;  %1424 = vmatprep.subr.mxu0 %v687_v31 }
  0xa6   : > { %1397 = vmatprep.subr.mxu1 %v581_v19  ;;  %1425 = vmatpush3.msra.mxu0 %v687_v31  ;;  %v918_v31 = vld [vmem:[#allocation11 + $0x50] sm:$0xff] }
  0xa7   : > { %1398 = vmatpush3.msra.mxu1 %v581_v19  ;;  %1426 = vmatprep.subr.mxu0 %v686_v32  ;;  %v783_v19 = vld [vmem:[#allocation10 + $0x20] sm:$0xff] }
  0xa8   : > { %1399 = vmatprep.subr.mxu1 %v580_v20  ;;  %1427 = vmatpush3.msra.mxu0 %v686_v32  ;;  %v917_v32 = vld [vmem:[#allocation11 + $0x48] sm:$0xff] }
  0xa9   : > { %1400 = vmatpush3.msra.mxu1 %v580_v20  ;;  %1428 = vmatprep.subr.mxu0 %v685_v42  ;;  %v782_v20 = vld [vmem:[#allocation10 + $0x18] sm:$0xff] }
  0xaa   : > { %1401 = vmatprep.subr.mxu1 %v579_v21  ;;  %1429 = vmatpush3.msra.mxu0 %v685_v42  ;;  %v1022_v42 = vld [vmem:[#allocation11 + $0xe8] sm:$0xff] }
  0xab   : > { %1402 = vmatpush3.msra.mxu1 %v579_v21  ;;  %1430 = vmatprep.subr.mxu0 %v684_v43  ;;  %v781_v21 = vld [vmem:[#allocation10 + $0x10] sm:$0xff] }
  0xac   : > { %1431 = vmatpush3.msra.mxu0 %v684_v43  ;;  %823 = vmatprep.subr.mxu1 %v810_v47  ;;  %v1018_v47 = vld [vmem:[#allocation11 + $0xc8] sm:$0xff] }
  0xad   : > { %1432 = vmatprep.subr.mxu0 %v683_v44 }
  0xae   : > { %1433 = vmatpush3.msra.mxu0 %v683_v44  ;;  %v1021_v44 = vld [vmem:[#allocation11 + $0xe0] sm:$0xff] }
  0xaf   : > { %1434 = vmatprep.subr.mxu0 %v682_v45 }
  0xb0   : > { %1435 = vmatpush3.msra.mxu0 %v682_v45  ;;  %v1020_v45 = vld [vmem:[#allocation11 + $0xd8] sm:$0xff] }
  0xb1   : > { %1436 = vmatprep.subr.mxu0 %v681_v46 }
  0xb2   : > { %1437 = vmatpush3.msra.mxu0 %v681_v46  ;;  %v1019_v46 = vld [vmem:[#allocation11 + $0xd0] sm:$0xff] }
  0xb3   : > { %1441 = vmatprep.subr.mxu0 %v923_v25 }
 0x152   : > { %v1370_v34 = vpop.f32.mrf.mxu0 }
 0x153   : > { %v572_v35 = vadd.f32 %v1370_v34, %v1265_v33  ;;  %v915_v34 = vld [vmem:[#allocation11 + $0x38] sm:$0xff] }
 0x154   : > { %v566_v36 = vpop.f32.mrf.mxu0 }
 0x155   : > { %v567_v37 = vadd.f32 %v1265_v33, %v566_v36  ;;  %v576_v38 = vmul.f32 0.2, %v572_v35  ;;  %v916_v33 = vld [vmem:[#allocation11 + $0x40] sm:$0xff]  ;;  %v913_v36 = vld [vmem:[#allocation11 + $0x28] sm:$0xff] }
 0x157   : > { %v575_v39 = vmul.f32 0.2, %v567_v37  ;;  %v578_v41 = vmax.f32 %v572_v35, %v576_v38  ;;  %v914_v35 = vld [vmem:[#allocation11 + $0x30] sm:$0xff]  ;;  %v1269_v38 = vld [vmem:[%s2198_s6] ss:$0 sm:$0xff] }
 0x159   : > { %v577_v40 = vmax.f32 %v567_v37, %v575_v39 }
 0x15b   : > { %1403 = vmatprep.mubr.f32.mxu1 %v577_v40 }
 0x15c   : > { %1404 = vmatmul.mubr.f32.vlgmr.msra.gmra.mxu1 %v578_v41  ;;  %v1023_v41 = vld [vmem:[#allocation11 + $0xf0] sm:$0xff] }
 0x15d   : > { %824 = vmatpush1.msra.mxu1 %v809_v48  ;;  %887 = vmatprep.mubr.f32.mxu1 %v1861_v24  ;;  %v1017_v48 = vld [vmem:[#allocation11 + $0xc0] sm:$0xff] }
 0x15e   : > { %825 = vmatprep.subr.mxu1 %v808_v49  ;;  %v1016_v49 = vld [vmem:[#allocation11 + $0xb8] sm:$0xff] }
 0x15f   : > { %826 = vmatpush1.msra.mxu1 %v807_v50  ;;  %v1015_v50 = vld [vmem:[#allocation11 + $0xb0] sm:$0xff] }
 0x160   : > { %827 = vmatprep.subr.mxu1 %v806_v51  ;;  %v912_v51 = vld [vmem:[#allocation11 + $0x20] sm:$0xff] }
 0x161   : > { %828 = vmatpush1.msra.mxu1 %v805_v52  ;;  %v1014_v52 = vld [vmem:[#allocation11 + $0xa8] sm:$0xff] }
 0x162   : > { %829 = vmatprep.subr.mxu1 %v804_v53  ;;  %v911_v53 = vld [vmem:[#allocation11 + $0x18] sm:$0xff] }
 0x163   : > { %830 = vmatpush1.msra.mxu1 %v803_v54  ;;  %v1013_v54 = vld [vmem:[#allocation11 + $0xa0] sm:$0xff] }
 0x164   : > { %831 = vmatprep.subr.mxu1 %v802_v55  ;;  %v910_v55 = vld [vmem:[#allocation11 + $0x10] sm:$0xff] }
 0x165   : > { %832 = vmatpush1.msra.mxu1 %v801_v56  ;;  %v1012_v56 = vld [vmem:[#allocation11 + $0x98] sm:$0xff] }
 0x166   : > { %833 = vmatprep.subr.mxu1 %v800_v57  ;;  %v909_v57 = vld [vmem:[#allocation11 + $0x8] sm:$0xff] }
 0x167   : > { %834 = vmatpush1.msra.mxu1 %v799_v58  ;;  %v1011_v58 = vld [vmem:[#allocation11 + $0x90] sm:$0xff] }
 0x168   : > { %835 = vmatprep.subr.mxu1 %v798_v59  ;;  %v908_v59 = vld [vmem:[#allocation11] sm:$0xff] }
 0x169   : > { %836 = vmatpush1.msra.mxu1 %v797_v60  ;;  %v1010_v60 = vld [vmem:[#allocation11 + $0x88] sm:$0xff] }
 0x16a   : > { %837 = vmatprep.subr.mxu1 %v796_v61  ;;  %v1009_v61 = vld [vmem:[#allocation11 + $0x80] sm:$0xff] }
 0x16b   : > { %838 = vmatpush1.msra.mxu1 %v795_v62  ;;  %v813_v62 = vlaneseq }
 0x16c   : > { %839 = vmatprep.subr.mxu1 %v794_v63 }
 0x16d   : > { %840 = vmatpush1.msra.mxu1 %v793_v0  ;;  %v814_v63 = vshrl.u32 %v813_v62, 7 }
 0x16e   : > { %841 = vmatprep.subr.mxu1 %v792_v1  ;;  %v811_v1 = vld [vmem:[%s2200_s8] sm:$0x3] }
 0x16f   : > { %842 = vmatpush1.msra.mxu1 %v791_v2  ;;  %v815_v0 = vsub.s32 0, %v814_v63  ;;  %v819_v2 = vsub.s32 1, %v814_v63 }
 0x170   : > { %843 = vmatprep.subr.mxu1 %v790_v3 }
 0x171   : > { %844 = vmatpush1.msra.mxu1 %v789_v4  ;;  %v816_v3 = vrot.slane %v811_v1, %v815_v0  ;;  %v820_v4 = vrot.slane %v811_v1, %v819_v2 }
 0x172   : > { %845 = vmatprep.subr.mxu1 %v788_v5 }
 0x173   : > { %846 = vmatpush1.msra.mxu1 %v787_v6 }
 0x174   : > { %847 = vmatprep.subr.mxu1 %v786_v7 }
 0x175   : > { %848 = vmatpush1.msra.mxu1 %v785_v8 }
 0x176   : > { %849 = vmatprep.subr.mxu1 %v784_v9 }
 0x177   : > { %850 = vmatpush1.msra.mxu1 %v783_v19 }
 0x178   : > { %851 = vmatprep.subr.mxu1 %v782_v20 }
 0x179   : > { %852 = vmatpush1.msra.mxu1 %v781_v21  ;;  %v1270_v21 = vld [vmem:[%s2202_s10] ss:$0 sm:$0xff] }
 0x17a   : > { %853 = vmatprep.subr.mxu1 %v780_v22 }
 0x17b   : > { %854 = vmatpush1.msra.mxu1 %v779_v23  ;;  %v1272_v23 = vld [vmem:[%s2202_s10 + $0x1] ss:$0 sm:$0xff] }
 0x17c   : > { %1476 = vmatprep.subr.mxu1 %v1024_v27 }
 0x21c   : > { %v1405_v11 = vpop.f32.mrf.mxu1 }
 0x21d   : > { %v674_v12 = vadd.f32 %v1405_v11, %v1268_v10 }
 0x21e   : > { %v668_v13 = vpop.f32.mrf.mxu1 }
 0x21f   : > { %v669_v14 = vadd.f32 %v1268_v10, %v668_v13  ;;  %v678_v15 = vmul.f32 0.2, %v674_v12 }
 0x221   : > { %v677_v16 = vmul.f32 0.2, %v669_v14  ;;  %v680_v18 = vmax.f32 %v674_v12, %v678_v15 }
 0x223   : > { %v679_v17 = vmax.f32 %v669_v14, %v677_v16 }
 0x225   : > { %1438 = vmatprep.mubr.f32.mxu0 %v679_v17 }
 0x226   : > { %1439 = vmatmul.mubr.f32.vlgmr.msra.gmra.mxu0 %v680_v18 }
 0x227   : > { %1442 = vmatpush3.msra.mxu0 %v923_v25 }
 0x228   : > { %1443 = vmatprep.subr.mxu0 %v922_v26 }
 0x229   : > { %1444 = vmatpush3.msra.mxu0 %v922_v26 }
 0x22a   : > { %1445 = vmatprep.subr.mxu0 %v921_v28 }
 0x22b   : > { %1446 = vmatpush3.msra.mxu0 %v921_v28 }
 0x22c   : > { %1447 = vmatprep.subr.mxu0 %v920_v29 }
 0x22d   : > { %1448 = vmatpush3.msra.mxu0 %v920_v29 }
 0x22e   : > { %1449 = vmatprep.subr.mxu0 %v919_v30 }
 0x22f   : > { %1450 = vmatpush3.msra.mxu0 %v919_v30 }
 0x230   : > { %1451 = vmatprep.subr.mxu0 %v918_v31 }
 0x231   : > { %1452 = vmatpush3.msra.mxu0 %v918_v31 }
 0x232   : > { %1453 = vmatprep.subr.mxu0 %v917_v32 }
 0x233   : > { %1454 = vmatpush3.msra.mxu0 %v917_v32 }
 0x234   : > { %1455 = vmatprep.subr.mxu0 %v916_v33 }
 0x235   : > { %1456 = vmatpush3.msra.mxu0 %v916_v33 }
 0x236   : > { %1457 = vmatprep.subr.mxu0 %v915_v34 }
 0x237   : > { %1458 = vmatpush3.msra.mxu0 %v915_v34 }
 0x238   : > { %1459 = vmatprep.subr.mxu0 %v914_v35 }
 0x239   : > { %1460 = vmatpush3.msra.mxu0 %v914_v35 }
 0x23a   : > { %1461 = vmatprep.subr.mxu0 %v913_v36 }
 0x23b   : > { %1462 = vmatpush3.msra.mxu0 %v913_v36 }
 0x23c   : > { %1463 = vmatprep.subr.mxu0 %v912_v51 }
 0x23d   : > { %1464 = vmatpush3.msra.mxu0 %v912_v51 }
 0x23e   : > { %1465 = vmatprep.subr.mxu0 %v911_v53 }
 0x23f   : > { %1466 = vmatpush3.msra.mxu0 %v911_v53 }
 0x240   : > { %1467 = vmatprep.subr.mxu0 %v910_v55 }
 0x241   : > { %1468 = vmatpush3.msra.mxu0 %v910_v55 }
 0x242   : > { %1469 = vmatprep.subr.mxu0 %v909_v57 }
 0x243   : > { %1470 = vmatpush3.msra.mxu0 %v909_v57 }
 0x244   : > { %1471 = vmatprep.subr.mxu0 %v908_v59 }
 0x245   : > { %1472 = vmatpush3.msra.mxu0 %v908_v59 }
 0x2e6   : > { %v1440_v37 = vpop.f32.mrf.mxu0 }
 0x2e7   : > { %v776_v43 = vadd.f32 %v1440_v37, %v1269_v38 }
 0x2e8   : > { %v770_v39 = vpop.f32.mrf.mxu0 }
 0x2e9   : > { %v771_v40 = vadd.f32 %v1269_v38, %v770_v39 }
 0x2eb   : > { %888 = vmatmul.mubr.f32.vlgmr.msra.gmra.mxu1 %v771_v40 }
 0x2ec   : > { %893 = vmatprep.mubr.f32.mxu1 %v1861_v24  ;;  %1477 = vmatpush3.msra.mxu1 %v1024_v27 }
 0x2ed   : > { %1478 = vmatprep.subr.mxu1 %v1023_v41 }
 0x2ee   : > { %1479 = vmatpush3.msra.mxu1 %v1023_v41 }
 0x2ef   : > { %894 = vmatmul.mubr.f32.gmra.mxu1 %v776_v43  ;;  %1480 = vmatprep.subr.mxu1 %v1022_v42 }
 0x2f0   : > { %1481 = vmatpush3.msra.mxu1 %v1022_v42 }
 0x2f1   : > { %1482 = vmatprep.subr.mxu1 %v1021_v44 }
 0x2f2   : > { %1483 = vmatpush3.msra.mxu1 %v1021_v44 }
 0x2f3   : > { %1484 = vmatprep.subr.mxu1 %v1020_v45 }
 0x2f4   : > { %1485 = vmatpush3.msra.mxu1 %v1020_v45 }
 0x2f5   : > { %1486 = vmatprep.subr.mxu1 %v1019_v46 }
 0x2f6   : > { %1487 = vmatpush3.msra.mxu1 %v1019_v46 }
 0x2f7   : > { %1488 = vmatprep.subr.mxu1 %v1018_v47 }
 0x2f8   : > { %1489 = vmatpush3.msra.mxu1 %v1018_v47 }
 0x2f9   : > { %1490 = vmatprep.subr.mxu1 %v1017_v48 }
 0x2fa   : > { %1491 = vmatpush3.msra.mxu1 %v1017_v48 }
 0x2fb   : > { %1492 = vmatprep.subr.mxu1 %v1016_v49 }
 0x2fc   : > { %1493 = vmatpush3.msra.mxu1 %v1016_v49 }
 0x2fd   : > { %1494 = vmatprep.subr.mxu1 %v1015_v50 }
 0x2fe   : > { %1495 = vmatpush3.msra.mxu1 %v1015_v50 }
 0x2ff   : > { %1496 = vmatprep.subr.mxu1 %v1014_v52 }
 0x300   : > { %1497 = vmatpush3.msra.mxu1 %v1014_v52 }
 0x301   : > { %1498 = vmatprep.subr.mxu1 %v1013_v54 }
 0x302   : > { %1499 = vmatpush3.msra.mxu1 %v1013_v54 }
 0x303   : > { %1500 = vmatprep.subr.mxu1 %v1012_v56 }
 0x304   : > { %1501 = vmatpush3.msra.mxu1 %v1012_v56 }
 0x305   : > { %1502 = vmatprep.subr.mxu1 %v1011_v58 }
 0x306   : > { %1503 = vmatpush3.msra.mxu1 %v1011_v58 }
 0x307   : > { %1504 = vmatprep.subr.mxu1 %v1010_v60 }
 0x308   : > { %1505 = vmatpush3.msra.mxu1 %v1010_v60 }
 0x309   : > { %1506 = vmatprep.subr.mxu1 %v1009_v61 }
 0x30a   : > { %1507 = vmatpush3.msra.mxu1 %v1009_v61 }
 0x3ab   : > { %v889_v5 = vpop.f32.mrf.mxu1 }
 0x3ac   : > { %v890_v6 = vadd.f32 %v889_v5, %v816_v3 }
 0x3ad   : > { %v891_v7 = vpop.f32.mrf.mxu1 }
 0x3ae   : > { %v900_v8 = vmul.f32 0.2, %v890_v6  ;;  %v892_v9 = vadd.f32 %v891_v7, %v820_v4 }
 0x3af   : > { %v895_v10 = vpop.f32.mrf.mxu1 }
 0x3b0   : > { %v904_v11 = vmax.f32 %v890_v6, %v900_v8  ;;  %v901_v12 = vmul.f32 0.2, %v892_v9  ;;  %v896_v13 = vadd.f32 %v895_v10, %v816_v3 }
 0x3b1   : > { %v897_v14 = vpop.f32.mrf.mxu1 }
 0x3b2   : > { %v905_v15 = vmax.f32 %v892_v9, %v901_v12  ;;  %v902_v16 = vmul.f32 0.2, %v896_v13  ;;  %v898_v17 = vadd.f32 %v897_v14, %v820_v4  ;;  %1473 = vmatprep.mubr.f32.mxu0 %v904_v11 }
 0x3b4   : > { %v906_v18 = vmax.f32 %v896_v13, %v902_v16  ;;  %v903_v19 = vmul.f32 0.2, %v898_v17  ;;  %1508 = vmatprep.mubr.f32.mxu1 %v905_v15 }
 0x3b6   : > { %v907_v20 = vmax.f32 %v898_v17, %v903_v19  ;;  %1474 = vmatmul.mubr.f32.vlgmr.msra.gmra.mxu0 %v906_v18 }
 0x3b8   : > { %1509 = vmatmul.mubr.f32.vlgmr.msra.gmra.mxu1 %v907_v20 }
 0x476   : > { %v1475_v22 = vpop.f32.mrf.mxu0 }
 0x477   : > { %v1003_v24 = vadd.f32 %v1475_v22, %v1270_v21 }
 0x478   : > { %v997_v25 = vpop.f32.mrf.mxu0  ;;  %v1510_v26 = vpop.f32.mrf.mxu1 }
 0x479   : > { %1007 = vst [vmem:[%s477_s9 + $0x10] sm:$0xff] %v1003_v24  ;;  %v998_v27 = vadd.f32 %v1270_v21, %v997_v25  ;;  %v1105_v28 = vadd.f32 %v1510_v26, %v1272_v23 }
 0x47a   : > { %v1099_v29 = vpop.f32.mrf.mxu1 }
 0x47b   : > { %1006 = vst [vmem:[%s477_s9] sm:$0xff] %v998_v27  ;;  %1109 = vst [vmem:[%s477_s9 + $0x18] sm:$0xff] %v1105_v28  ;;  %v1100_v30 = vadd.f32 %v1272_v23, %v1099_v29 }
 0x47d   : > { %1108 = vst [vmem:[%s477_s9 + $0x8] sm:$0xff] %v1100_v30 }
 0x47e   : > { %1786 = shalt.err (!%p1783_p3)
}
 0x47f   : > { %s1787_s5 = scalar_lea.hbm %s2149_s29, 512  ;;  %s1791_s14 = scalar_lea.hbm %s2203_s11, 1024 }
 0x480   : > { %p1788_p4 = scmp.ne.s32.totalorder %s2149_s29, %s1787_s5  ;;  %p1792_p2 = scmp.lt.s32.totalorder %s2149_s29, %s2203_s11 }
 0x481   : > { %p1793_p7 = scmp.lt.s32.totalorder %s1791_s14, %s1787_s5 }
 0x482   : > { %p1789_p12 = pnand %p1788_p4, %p2237_p11 }
 0x483   : > { %p1794_p8 = por %p1793_p7, %p1792_p2 }
 0x484   : > { %p1790_p6 = pneg %p1789_p12 }
 0x486   : > { %p1795_p10 = pnand %p1794_p8, %p1790_p6 }
 0x488   : > { %1798 = shalt.err (!%p1795_p10)
}
 0x489   : > { %s1863_s24 = smov 256   ;;  %s1864_s13 = smov 16  }
 0x48a   : > { %1533 = dma.vmem_to_hbm [thread:$0]  (%p2237_p11), %s2144_s21, 512, %s2149_s29, %s1111_s23, %s1863_s24, %s1863_s24, %s1864_s13  }
 0x48b PF: > { %s1140_s27 = sand.u32 1, %s1837_s17   ;;  %p2238_p13 = scmp.ne.s32.totalorder %s2225_s26, 0 }
 0x48c   : > { %p2239_p0 = scmp.ge.s32.totalorder %s1849_s20, 2  ;;  %s1141_s28 = scalar_lea.sflag [#allocation4], %s1140_s27 }
 0x48e   : > { %p1556_p5 = pnand %p2239_p0, %p2238_p13 }
 0x490   : > { %p1557_p9 = pneg %p1556_p5 }
 0x492   : > { %1832 = dma.done.wait (%p1557_p9), %s1141_s28, 512  }
 0x493   : > { %1834 = vsyncadd (%p1557_p9), %s1141_s28, 4294966784  ;;  %p27_p1 = scmp.ge.s32.totalorder %s2033_s30, 4   ;;  %s2240_s17 = smov %s1841_s18 }
 0x494   : > { %s2241_s18 = smov %s1845_s19  ;;  %s2242_s19 = smov %s2045_s22 }
 0x495   : > { %s2243_s20 = smov %s2033_s30  ;;  %29 = sbr.rel (!%p27_p1) target bundleno = 14 (0xe), region = 131 }
 0x49a   :  { %1146 = vsyncpa [#allocation3], 1 }
 0x49b   :  { %1148 = vsyncpa [#allocation3 + $0x1], 1 }
 0x49c   :  { %1149 = vsyncpa [#allocation6], 1 }
 0x49d   :  { %1150 = vsyncpa [#allocation9], 1 }
 0x49e   :  { %1151 = vsyncpa [#allocation12], 1 }
 0x49f   :  { %1152 = vsyncpa [#allocation4], 1 }
 0x4a0   :  { %1154 = vsyncpa [#allocation4 + $0x1], 1 }

// kernel: tpu_custom_call.1
= control target key start
LH: loop header
LB: loop body
LE: loop exit
PB: predicated region body
PF: predicated region fallthrough
CT: control target
= control target key end

     0   :  { %s2192_s0 = inlined_call_operand.hbm [shape: f32[32,32], index: 0, kind: input, shape index: {}]   ;;  %s2193_s1 = inlined_call_operand.hbm [shape: f32[32,128], index: 1, kind: input, shape index: {}]   ;;  %s2194_s2 = inlined_call_operand.vmem [shape: f32[1,128], index: 2, kind: input, shape index: {}]   ;;  %s2195_s3 = inlined_call_operand.hbm [shape: f32[128,128], index: 3, kind: input, shape index: {}]   ;;  %s2196_s4 = inlined_call_operand.vmem [shape: f32[1,128], index: 4, kind: input, shape index: {}]   ;;  %s2197_s5 = inlined_call_operand.hbm [shape: f32[128,128], index: 5, kind: input, shape index: {}]   ;;  %s2198_s6 = inlined_call_operand.vmem [shape: f32[1,128], index: 6, kind: input, shape index: {}]   ;;  %s2199_s7 = inlined_call_operand.hbm [shape: f32[128,256], index: 7, kind: input, shape index: {}]   ;;  %s2200_s8 = inlined_call_operand.vmem [shape: f32[1,256], index: 8, kind: input, shape index: {}]   ;;  %s2201_s9 = inlined_call_operand.hbm [shape: f32[2,128,128], index: 9, kind: input, shape index: {}]   ;;  %s2202_s10 = inlined_call_operand.vmem [shape: f32[2,1,128], index: 10, kind: input, shape index: {}]   ;;  %s2203_s11 = inlined_call_operand.hbm [shape: f32[32,256], index: 11, kind: output, shape index: {}]  }
   0x1   :  { %2210 = sst [smem:[#allocation19_spill]] %s2193_s1 }
   0x2   :  { %2211 = sst [smem:[#allocation20_spill]] %s2195_s3 }
   0x3   :  { %2212 = sst [smem:[#allocation21_spill]] %s2197_s5 }
   0x4   :  { %2213 = sst [smem:[#allocation22_spill]] %s2199_s7 }
   0x5   :  { %2214 = sst [smem:[#allocation23_spill]] %s2201_s9 }
   0x6   :  { %16 = vsyncpa [#allocation3], 0 }
   0x7   :  { %18 = vsyncpa [#allocation3 + $0x1], 0 }
   0x8   :  { %19 = vsyncpa [#allocation6], 0 }
   0x9   :  { %20 = vsyncpa [#allocation9], 0 }
   0xa   :  { %21 = vsyncpa [#allocation12], 0 }
   0xb   :  { %22 = vsyncpa [#allocation4], 0 }
   0xc   :  { %24 = vsyncpa [#allocation4 + $0x1], 0  ;;  %s1925_s17 = smov 0   ;;  %s1927_s18 = smov 0  }
   0xd   :  { %s1929_s19 = smov 0   ;;  %s1931_s20 = smov 0  }
   0xe LB: > { %s1851_s21 = smov [#allocation5]   ;;  %s1946_s23 = sadd.s32 4294967295, %s1849_s20   ;;  %s1849_s20 = sphi %s1931_s20, %s2243_s20   ;;  %s1845_s19 = sphi %s1929_s19, %s2242_s19   ;;  %s1841_s18 = sphi %s1927_s18, %s2241_s18   ;;  %s1837_s17 = sphi %s1925_s17, %s2240_s17  }
   0xf   : > { %s309_s22 = sshll.u32 %s1851_s21, 4  ;;  %p1247_p0 = scmp.ge.s32.totalorder %s1849_s20, 1  ;;  %s310_s22 = int_to_ptr.vmem [resolvable:$true] %s309_s22 }
  0x10   : > { %p2206_p1 = scmp.eq.s32.totalorder %s1946_s23, 0  ;;  %p297_p2 = scmp.lt.s32.totalorder %s1849_s20, 3 }
  0x11   : > { %s1852_s25 = smov [#allocation8]   ;;  %s1853_s28 = smov [#allocation7]  }
  0x12   : > { %p1951_p3 = pnand %p1247_p0, %p297_p2  ;;  %s341_s26 = sshll.u32 %s1852_s25, 4  ;;  %s1964_s26 = int_to_ptr.vmem [resolvable:$true] %s341_s26 }
  0x13   : > { %s325_s29 = sshll.u32 %s1853_s28, 4  ;;  %s1626_s12 = scalar_lea.vmem %s310_s22, 512  ;;  %s1966_s29 = int_to_ptr.vmem [resolvable:$true] %s325_s29 }
  0x14   : > { %s2215_s24 = scalar_select %p1951_p3, 1, 0 }
  0x15   : > { %p1535_p5 = pneg %p1951_p3  ;;  %p1627_p8 = scmp.ne.s32.totalorder %s310_s22, %s1626_s12 }
  0x16   : > { %p1634_p11 = scmp.lt.s32.totalorder %s310_s22, %s310_s22  ;;  %p1635_p12 = scmp.lt.s32.totalorder %s1626_s12, %s1626_s12 }
  0x17   : > { %p1960_p6 = pnand %p1535_p5, %p2206_p1 }
  0x18   : > { %p1636_p13 = por %p1635_p12, %p1634_p11 }
  0x19   : > { %p1970_p7 = pneg %p1960_p6 }
  0x1b   : > { %p1629_p9 = pnand %p1627_p8, %p1970_p7 }
  0x1d   : > { %p1630_p10 = pneg %p1629_p9 }
  0x1f   : > { %p1637_p0 = pnand %p1636_p13, %p1630_p10 }
  0x21   : > { %1640 = shalt.err (!%p1637_p0)
}
  0x22   : > { %s2204_s13 = smov 128   ;;  %s2205_s14 = smov 8  }
  0x23   : > { %s2218_s1 = sld [smem:[#allocation19_spill]]  ;;  %s1652_s21 = scalar_lea.vmem %s1964_s26, 2048 }
  0x24   : > { %p1653_p2 = scmp.ne.s32.totalorder %s1964_s26, %s1652_s21  ;;  %p1660_p9 = scmp.lt.s32.totalorder %s1964_s26, %s1964_s26 }
  0x25   : > { %p1661_p10 = scmp.lt.s32.totalorder %s1652_s21, %s1652_s21 }
  0x26   : > { %p1655_p5 = pnand %p1653_p2, %p1970_p7 }
  0x27   : > { %p1662_p11 = por %p1661_p10, %p1660_p9 }
  0x28   : > { %p1656_p8 = pneg %p1655_p5 }
  0x29   : > { %1538 = dma.hbm_to_vmem [thread:$0]  (!%p1960_p6), %s2218_s1, 512, %s310_s22, [#allocation6], %s2204_s13, %s2204_s13, %s2205_s14  }
  0x2a   : > { %p1663_p12 = pnand %p1662_p11, %p1656_p8 }
  0x2c   : > { %1666 = shalt.err (!%p1663_p12)
}
  0x2d   : > { %s2219_s5 = sld [smem:[#allocation21_spill]]  ;;  %s1678_s22 = scalar_lea.vmem %s1966_s29, 2048 }
  0x2e   : > { %p1679_p13 = scmp.ne.s32.totalorder %s1966_s29, %s1678_s22  ;;  %p1686_p5 = scmp.lt.s32.totalorder %s1966_s29, %s1966_s29 }
  0x2f   : > { %p1687_p8 = scmp.lt.s32.totalorder %s1678_s22, %s1678_s22 }
  0x30   : > { %p1681_p0 = pnand %p1679_p13, %p1970_p7 }
  0x31   : > { %p1688_p9 = por %p1687_p8, %p1686_p5 }
  0x32   : > { %p1682_p2 = pneg %p1681_p0 }
  0x33   : > { %1544 = dma.hbm_to_vmem [thread:$0]  (!%p1960_p6), %s2219_s5, 2048, %s1964_s26, [#allocation9], %s2204_s13, %s2204_s13, %s2205_s14  }
  0x34   : > { %p1689_p10 = pnand %p1688_p9, %p1682_p2 }
  0x36   : > { %1692 = shalt.err (!%p1689_p10)
}
  0x37   : > { %s2220_s3 = sld [smem:[#allocation20_spill]]  ;;  %s1856_s26 = smov [#allocation10]  }
  0x38   : > { %s357_s16 = sshll.u32 %s1856_s26, 4  ;;  %s358_s16 = int_to_ptr.vmem [resolvable:$true] %s357_s16 }
  0x39   : > { %s1704_s21 = scalar_lea.vmem %s358_s16, 4096  ;;  %p1712_p0 = scmp.lt.s32.totalorder %s358_s16, %s358_s16 }
  0x3a   : > { %p1705_p11 = scmp.ne.s32.totalorder %s358_s16, %s1704_s21  ;;  %p1713_p2 = scmp.lt.s32.totalorder %s1704_s21, %s1704_s21 }
  0x3c   : > { %p1707_p12 = pnand %p1705_p11, %p1970_p7  ;;  %p1714_p5 = por %p1713_p2, %p1712_p0 }
  0x3d   : > { %1541 = dma.hbm_to_vmem [thread:$0]  (!%p1960_p6), %s2220_s3, 2048, %s1966_s29, [#allocation6], %s2204_s13, %s2204_s13, %s2205_s14  }
  0x3e   : > { %p1708_p13 = pneg %p1707_p12 }
  0x40   : > { %p1715_p8 = pnand %p1714_p5, %p1708_p13 }
  0x42   : > { %1718 = shalt.err (!%p1715_p8)
}
  0x43   : > { %s1857_s25 = smov 256   ;;  %s1858_s28 = smov 16  }
  0x44   : > { %s2221_s7 = sld [smem:[#allocation22_spill]]  ;;  %s1859_s12 = smov [#allocation11]  }
  0x45   : > { %s373_s15 = sshll.u32 %s1859_s12, 4  ;;  %s374_s15 = int_to_ptr.vmem [resolvable:$true] %s373_s15 }
  0x46   : > { %s1730_s26 = scalar_lea.vmem %s374_s15, 4096  ;;  %p1738_p12 = scmp.lt.s32.totalorder %s374_s15, %s374_s15 }
  0x47   : > { %p1731_p9 = scmp.ne.s32.totalorder %s374_s15, %s1730_s26  ;;  %p1739_p13 = scmp.lt.s32.totalorder %s1730_s26, %s1730_s26 }
  0x49   : > { %p1733_p10 = pnand %p1731_p9, %p1970_p7  ;;  %p1740_p0 = por %p1739_p13, %p1738_p12 }
  0x4a   : > { %1547 = dma.hbm_to_vmem [thread:$0]  (!%p1960_p6), %s2221_s7, 4096, %s358_s16, [#allocation9], %s1857_s25, %s1857_s25, %s1858_s28  }
  0x4b   : > { %p1734_p11 = pneg %p1733_p10 }
  0x4d   : > { %p1741_p2 = pnand %p1740_p0, %p1734_p11 }
  0x4f   : > { %1744 = shalt.err (!%p1741_p2)
}
  0x50   : > { %s2222_s9 = sld [smem:[#allocation23_spill]]  ;;  %s1246_s27 = sadd.s32 4294967294, %s1849_s20  }
  0x51   : > { %s2033_s30 = sadd.s32 1, %s1849_s20   ;;  %s37_s25 = sadd.s32 1, %s1845_s19 }
  0x52   : > { %s34_s28 = ssub.s32 %s1849_s20, %s2033_s30  ;;  %p44_p7 = scmp.ne.s32.totalorder %s1845_s19, %s1841_s18 }
  0x53   : > { %p35_p5 = scmp.eq.s32.totalorder %s34_s28, 0  ;;  %p45_p8 = scmp.eq.s32.totalorder %s1849_s20, 0 }
  0x54   : > { %p50_p9 = scmp.ne.s32.totalorder %s1841_s18, %s1837_s17  ;;  %p284_p10 = scmp.eq.s32.totalorder %s1946_s23, 1 }
  0x55   : > { %s2045_s22 = scalar_select %p35_p5, %s1845_s19, %s37_s25  }
  0x56   : > { %1550 = dma.hbm_to_vmem [thread:$0]  (!%p1960_p6), %s2222_s9, 4096, %s374_s15, [#allocation12], %s2204_s13, %s2204_s13, %s2205_s14  }
  0x57   : > { %p46_p11 = por %p45_p8, %p44_p7  ;;  %p2049_p12 = por %p2206_p1, %p50_p9 }
  0x58   : > { %p2053_p6 = por %p284_p10, %p44_p7  ;;  %p290_p13 = scmp.eq.s32.totalorder %s1246_s27, 1 }
  0x59   : > { %s2223_s29 = scalar_select %p2049_p12, 1, 0 }
  0x5a   : > { %s2224_s12 = scalar_select %p2053_p6, 1, 0 }
  0x5b   : > { %p1564_p0 = scmp.lt.s32.totalorder %s1849_s20, 2  ;;  %s390_s15 = sand.u32 1, %s1845_s19  }
  0x5c   : > { %p2059_p2 = por %p290_p13, %p50_p9  ;;  %s1254_s21 = sshll.u32 %s390_s15, 4 }
  0x5d   : > { %s1279_s16 = sshll.u32 %s1849_s20, 8  ;;  %s394_s14 = scalar_lea.vmem [#allocation2], %s1254_s21 }
  0x5e   : > { %s2225_s26 = scalar_select %p2059_p2, 1, 0 }
  0x5f   : > { %s2067_s13 = scalar_lea.hbm %s2192_s0, %s1279_s16  ;;  %s401_s1 = sshll.u32 %s394_s14, 4  ;;  %s2073_s1 = int_to_ptr.vmem [resolvable:$true] %s401_s1 }
  0x60   : > { %p2069_p7 = pnand %p1564_p0, %p46_p11  ;;  %s2075_s3 = scalar_lea.sflag [#allocation3], %s390_s15 }
  0x61   : > { %s1745_s5 = scalar_lea.hbm %s2067_s13, 256  ;;  %s1750_s21 = scalar_lea.hbm %s2192_s0, 512 }
  0x62   : > { %p1746_p5 = scmp.ne.s32.totalorder %s2067_s13, %s1745_s5  ;;  %p1747_p8 = pneg %p2069_p7 }
  0x63   : > { %p1751_p11 = scmp.lt.s32.totalorder %s2067_s13, %s2192_s0  ;;  %p1752_p13 = scmp.lt.s32.totalorder %s1750_s21, %s1745_s5 }
  0x64   : > { %p1748_p9 = pnand %p1747_p8, %p1746_p5 }
  0x65   : > { %p1753_p0 = por %p1752_p13, %p1751_p11 }
  0x66   : > { %p1749_p10 = pneg %p1748_p9 }
  0x68   : > { %p1754_p4 = pnand %p1753_p0, %p1749_p10 }
  0x6a   : > { %1757 = shalt.err (!%p1754_p4)
}
  0x6b   : > { %s1758_s15 = scalar_lea.vmem %s2073_s1, 256  ;;  %s1860_s7 = smov [#allocation2]  }
  0x6c   : > { %p1759_p1 = scmp.ne.s32.totalorder %s2073_s1, %s1758_s15  ;;  %s1763_s9 = sshll.u32 %s1860_s7, 4  ;;  %s1764_s9 = int_to_ptr.vmem [resolvable:$false] %s1763_s9 }
  0x6d   : > { %s1765_s16 = scalar_lea.vmem %s1764_s9, 512  ;;  %p1766_p9 = scmp.lt.s32.totalorder %s2073_s1, %s1764_s9 }
  0x6e   : > { %p1761_p2 = pnand %p1759_p1, %p1747_p8  ;;  %p1767_p6 = scmp.lt.s32.totalorder %s1765_s16, %s1758_s15 }
  0x70   : > { %p1762_p5 = pneg %p1761_p2  ;;  %p1768_p12 = por %p1767_p6, %p1766_p9 }
  0x72   : > { %p1769_p3 = pnand %p1768_p12, %p1762_p5 }
  0x74   : > { %1772 = shalt.err (!%p1769_p3)
}
  0x75   : > { %s2227_s5 = smov 8   ;;  %s2228_s25 = smov 128  }
  0x76   : > { %1554 = dma.hbm_to_vmem [thread:$0]  (!%p2069_p7), %s2067_s13, 256, %s2073_s1, %s2075_s3, %s2228_s25, %s2228_s25, %s2227_s5  }
  0x77   : > { %p2229_p1 = scmp.ne.s32.totalorder %s2215_s24, 0 }
  0x78   : > { %s2102_s7 = sand.u32 (!%p2229_p1), 1, %s1841_s18   ;;  %p2230_p3 = scmp.ne.s32.totalorder (!%p2229_p1), %s2223_s29, 0 }
  0x79   : > { %413 = sbr.rel (%p2229_p1) target bundleno = 1163 (0x48b), region = 64  ;;  %s1258_s9 = sshll.u32 (!%p2229_p1), %s2102_s7, 4 }
  0x7a   : > { %s416_s21 = scalar_lea.sflag (!%p2229_p1), [#allocation3], %s2102_s7  ;;  %s419_s14 = scalar_lea.vmem (!%p2229_p1), [#allocation2], %s1258_s9 }
  0x7e   : > { %1816 = dma.done.wait (%p2230_p3), %s416_s21, 256  }
  0x7f   : > { %1818 = vsyncadd (%p2230_p3), %s416_s21, 4294967040  ;;  %p2231_p4 = scmp.eq.s32.totalorder %s1946_s23, 0 }
  0x81   : > { %1820 = dma.done.wait (%p2231_p4), [#allocation6], 2560   ;;  %p2232_p12 = pmov %p2231_p4 }
  0x82   : > { %p2233_p6 = pmov %p2231_p4 }
  0x83   : > { %1822 = vsyncadd (%p2232_p12), [#allocation6], 4294964736 }
  0x84   : > { %1824 = dma.done.wait (%p2233_p6), [#allocation9], 6144   ;;  %p2234_p2 = pmov %p2231_p4 }
  0x86   : > { %1826 = vsyncadd (%p2234_p2), [#allocation9], 4294961152  ;;  %p2235_p7 = pmov %p2234_p2 }
  0x87   : > { %p2236_p8 = pmov %p2234_p2 }
  0x88   : > { %1828 = dma.done.wait (%p2235_p7), [#allocation12], 4096  }
  0x89   : > { %1830 = vsyncadd (%p2236_p8), [#allocation12], 4294963200  ;;  %vm493_vm0 = vcmask 261120   ;;  %v485_v0 = vld [vmem:[#allocation5 + $0x18] sm:$0xff]  ;;  %v484_v1 = vld [vmem:[#allocation5 + $0x10] sm:$0xff]  ;;  %s1264_s16 = sshll.u32 %s2102_s7, 5 }
  0x8a   : > { %1360 = vmatprep.subr.mxu0 %v485_v0  ;;  %v480_v2 = vld [vmem:[%s419_s14] sm:$0xff]  ;;  %v483_v3 = vld [vmem:[#allocation5 + $0x8] sm:$0xff]  ;;  %v594_v4 = vld [vmem:[#allocation7 + $0x78] sm:$0xff]  ;;  %s477_s9 = scalar_lea.vmem [#allocation13], %s1264_s16  ;;  %s1281_s3 = sshll.u32 %s1946_s23, 9 }
  0x8b   : > { %1361 = vmatpush3.msra.mxu0 %v485_v0  ;;  %1368 = vmatprep.mubr.msk.f32.mxu0 %vm493_vm0, %v480_v2  ;;  %v593_v5 = vld [vmem:[#allocation7 + $0x70] sm:$0xff]  ;;  %v482_v6 = vld [vmem:[#allocation5] sm:$0xff]  ;;  %v592_v7 = vld [vmem:[#allocation7 + $0x68] sm:$0xff]  ;;  %s1125_s21 = sshll.u32 %s477_s9, 4  ;;  %s2149_s29 = scalar_lea.hbm %s2203_s11, %s1281_s3  ;;  %s2144_s21 = int_to_ptr.vmem [resolvable:$true] %s1125_s21 }
  0x8c   : > { %1362 = vmatprep.subr.mxu0 %v484_v1  ;;  %1371 = vmatprep.subr.mxu1 %v594_v4  ;;  %v481_v8 = vld [vmem:[%s419_s14 + $0x8] sm:$0xff]  ;;  %v591_v9 = vld [vmem:[#allocation7 + $0x60] sm:$0xff]  ;;  %v589_v11 = vld [vmem:[#allocation7 + $0x50] sm:$0xff]  ;;  %s1111_s23 = scalar_lea.sflag [#allocation4], %s2102_s7  ;;  %s1773_s27 = scalar_lea.vmem %s2144_s21, 512 }
  0x8d   : > { %1363 = vmatpush3.msra.mxu0 %v484_v1  ;;  %1372 = vmatpush3.msra.mxu1 %v594_v4  ;;  %v590_v10 = vld [vmem:[#allocation7 + $0x58] sm:$0xff]  ;;  %v588_v12 = vld [vmem:[#allocation7 + $0x48] sm:$0xff]  ;;  %v587_v13 = vld [vmem:[#allocation7 + $0x40] sm:$0xff]  ;;  %p1774_p10 = scmp.ne.s32.totalorder %s2144_s21, %s1773_s27  ;;  %p2237_p11 = scmp.ne.s32.totalorder %s2224_s12, 0 }
  0x8e   : > { %1364 = vmatprep.subr.mxu0 %v483_v3  ;;  %1373 = vmatprep.subr.mxu1 %v593_v5  ;;  %v586_v14 = vld [vmem:[#allocation7 + $0x38] sm:$0xff]  ;;  %v585_v15 = vld [vmem:[#allocation7 + $0x30] sm:$0xff]  ;;  %v584_v16 = vld [vmem:[#allocation7 + $0x28] sm:$0xff]  ;;  %s1862_s28 = smov [#allocation13]  }
  0x8f   : > { %1365 = vmatpush3.msra.mxu0 %v483_v3  ;;  %1374 = vmatpush3.msra.mxu1 %v593_v5  ;;  %v583_v17 = vld [vmem:[#allocation7 + $0x20] sm:$0xff]  ;;  %v582_v18 = vld [vmem:[#allocation7 + $0x18] sm:$0xff]  ;;  %v581_v19 = vld [vmem:[#allocation7 + $0x10] sm:$0xff]  ;;  %p1775_p13 = pnand %p1774_p10, %p2237_p11  ;;  %s1777_s15 = sshll.u32 %s1862_s28, 4  ;;  %s1778_s15 = int_to_ptr.vmem [resolvable:$false] %s1777_s15 }
  0x90   : > { %1366 = vmatprep.subr.mxu0 %v482_v6  ;;  %1375 = vmatprep.subr.mxu1 %v592_v7  ;;  %v580_v20 = vld [vmem:[#allocation7 + $0x8] sm:$0xff]  ;;  %v579_v21 = vld [vmem:[#allocation7] sm:$0xff]  ;;  %v696_v22 = vld [vmem:[#allocation8 + $0x78] sm:$0xff]  ;;  %s1779_s16 = scalar_lea.vmem %s1778_s15, 1024  ;;  %p1780_p5 = scmp.lt.s32.totalorder %s2144_s21, %s1778_s15 }
  0x91   : > { %1367 = vmatpush3.msra.mxu0 %v482_v6  ;;  %1376 = vmatpush3.msra.mxu1 %v592_v7  ;;  %v695_v23 = vld [vmem:[#allocation8 + $0x70] sm:$0xff]  ;;  %v694_v24 = vld [vmem:[#allocation8 + $0x68] sm:$0xff]  ;;  %v693_v25 = vld [vmem:[#allocation8 + $0x60] sm:$0xff]  ;;  %p1776_p0 = pneg %p1775_p13  ;;  %p1781_p9 = scmp.lt.s32.totalorder %s1779_s16, %s1773_s27 }
  0x92   : > { %1369 = vmatmul.mubr.msk.f32.vlgmr.msra.gmra.mxu0 %vm493_vm0, %v481_v8  ;;  %1377 = vmatprep.subr.mxu1 %v591_v9  ;;  %v692_v26 = vld [vmem:[#allocation8 + $0x58] sm:$0xff]  ;;  %v691_v27 = vld [vmem:[#allocation8 + $0x50] sm:$0xff]  ;;  %v690_v28 = vld [vmem:[#allocation8 + $0x48] sm:$0xff] }
  0x93   : > { %1378 = vmatpush3.msra.mxu1 %v591_v9  ;;  %1406 = vmatprep.subr.mxu0 %v696_v22  ;;  %v689_v29 = vld [vmem:[#allocation8 + $0x40] sm:$0xff]  ;;  %v688_v30 = vld [vmem:[#allocation8 + $0x38] sm:$0xff]  ;;  %v687_v31 = vld [vmem:[#allocation8 + $0x30] sm:$0xff]  ;;  %p1782_p1 = por %p1781_p9, %p1780_p5 }
  0x94   : > { %1379 = vmatprep.subr.mxu1 %v590_v10  ;;  %1407 = vmatpush3.msra.mxu0 %v696_v22  ;;  %v686_v32 = vld [vmem:[#allocation8 + $0x28] sm:$0xff]  ;;  %v1265_v33 = vld [vmem:[%s2194_s2] ss:$0 sm:$0xff]  ;;  %v684_v43 = vld [vmem:[#allocation8 + $0x18] sm:$0xff] }
  0x95   : > { %1380 = vmatpush3.msra.mxu1 %v590_v10  ;;  %1408 = vmatprep.subr.mxu0 %v695_v23  ;;  %v685_v42 = vld [vmem:[#allocation8 + $0x20] sm:$0xff]  ;;  %v683_v44 = vld [vmem:[#allocation8 + $0x10] sm:$0xff]  ;;  %v682_v45 = vld [vmem:[#allocation8 + $0x8] sm:$0xff]  ;;  %p1783_p3 = pnand %p1782_p1, %p1776_p0 }
  0x96   : > { %1381 = vmatprep.subr.mxu1 %v589_v11  ;;  %1409 = vmatpush3.msra.mxu0 %v695_v23  ;;  %v681_v46 = vld [vmem:[#allocation8] sm:$0xff]  ;;  %v810_v47 = vld [vmem:[#allocation10 + $0xf8] sm:$0xff]  ;;  %v809_v48 = vld [vmem:[#allocation10 + $0xf0] sm:$0xff] }
  0x97   : > { %1382 = vmatpush3.msra.mxu1 %v589_v11  ;;  %1410 = vmatprep.subr.mxu0 %v694_v24  ;;  %v808_v49 = vld [vmem:[#allocation10 + $0xe8] sm:$0xff]  ;;  %v807_v50 = vld [vmem:[#allocation10 + $0xe0] sm:$0xff]  ;;  %v806_v51 = vld [vmem:[#allocation10 + $0xd8] sm:$0xff] }
  0x98   : > { %1383 = vmatprep.subr.mxu1 %v588_v12  ;;  %1411 = vmatpush3.msra.mxu0 %v694_v24  ;;  %v805_v52 = vld [vmem:[#allocation10 + $0xd0] sm:$0xff]  ;;  %v804_v53 = vld [vmem:[#allocation10 + $0xc8] sm:$0xff]  ;;  %v803_v54 = vld [vmem:[#allocation10 + $0xc0] sm:$0xff]  ;;  %v1861_v24 = vmov 0.0  }
  0x99   : > { %1384 = vmatpush3.msra.mxu1 %v588_v12  ;;  %1412 = vmatprep.subr.mxu0 %v693_v25  ;;  %v802_v55 = vld [vmem:[#allocation10 + $0xb8] sm:$0xff]  ;;  %v801_v56 = vld [vmem:[#allocation10 + $0xb0] sm:$0xff]  ;;  %v800_v57 = vld [vmem:[#allocation10 + $0xa8] sm:$0xff] }
  0x9a   : > { %1385 = vmatprep.subr.mxu1 %v587_v13  ;;  %1413 = vmatpush3.msra.mxu0 %v693_v25  ;;  %v799_v58 = vld [vmem:[#allocation10 + $0xa0] sm:$0xff]  ;;  %v798_v59 = vld [vmem:[#allocation10 + $0x98] sm:$0xff]  ;;  %v797_v60 = vld [vmem:[#allocation10 + $0x90] sm:$0xff] }
  0x9b   : > { %1386 = vmatpush3.msra.mxu1 %v587_v13  ;;  %1414 = vmatprep.subr.mxu0 %v692_v26  ;;  %v796_v61 = vld [vmem:[#allocation10 + $0x88] sm:$0xff]  ;;  %v795_v62 = vld [vmem:[#allocation10 + $0x80] sm:$0xff]  ;;  %v794_v63 = vld [vmem:[#allocation10 + $0x78] sm:$0xff] }
  0x9c   : > { %1387 = vmatprep.subr.mxu1 %v586_v14  ;;  %1415 = vmatpush3.msra.mxu0 %v692_v26  ;;  %v793_v0 = vld [vmem:[#allocation10 + $0x70] sm:$0xff]  ;;  %v792_v1 = vld [vmem:[#allocation10 + $0x68] sm:$0xff]  ;;  %v791_v2 = vld [vmem:[#allocation10 + $0x60] sm:$0xff] }
  0x9d   : > { %1388 = vmatpush3.msra.mxu1 %v586_v14  ;;  %1416 = vmatprep.subr.mxu0 %v691_v27  ;;  %v790_v3 = vld [vmem:[#allocation10 + $0x58] sm:$0xff]  ;;  %v789_v4 = vld [vmem:[#allocation10 + $0x50] sm:$0xff]  ;;  %v788_v5 = vld [vmem:[#allocation10 + $0x48] sm:$0xff] }
  0x9e   : > { %1389 = vmatprep.subr.mxu1 %v585_v15  ;;  %1417 = vmatpush3.msra.mxu0 %v691_v27  ;;  %v787_v6 = vld [vmem:[#allocation10 + $0x40] sm:$0xff]  ;;  %v786_v7 = vld [vmem:[#allocation10 + $0x38] sm:$0xff]  ;;  %v785_v8 = vld [vmem:[#allocation10 + $0x30] sm:$0xff] }
  0x9f   : > { %1390 = vmatpush3.msra.mxu1 %v585_v15  ;;  %1418 = vmatprep.subr.mxu0 %v690_v28  ;;  %v784_v9 = vld [vmem:[#allocation10 + $0x28] sm:$0xff]  ;;  %v1268_v10 = vld [vmem:[%s2196_s4] ss:$0 sm:$0xff]  ;;  %v923_v25 = vld [vmem:[#allocation11 + $0x78] sm:$0xff] }
  0xa0   : > { %1391 = vmatprep.subr.mxu1 %v584_v16  ;;  %1419 = vmatpush3.msra.mxu0 %v690_v28  ;;  %v780_v22 = vld [vmem:[#allocation10 + $0x8] sm:$0xff]  ;;  %v779_v23 = vld [vmem:[#allocation10] sm:$0xff]  ;;  %v922_v26 = vld [vmem:[#allocation11 + $0x70] sm:$0xff] }
  0xa1   : > { %1392 = vmatpush3.msra.mxu1 %v584_v16  ;;  %1420 = vmatprep.subr.mxu0 %v689_v29  ;;  %v1024_v27 = vld [vmem:[#allocation11 + $0xf8] sm:$0xff]  ;;  %v921_v28 = vld [vmem:[#allocation11 + $0x68] sm:$0xff] }
  0xa2   : > { %1393 = vmatprep.subr.mxu1 %v583_v17  ;;  %1421 = vmatpush3.msra.mxu0 %v689_v29  ;;  %v920_v29 = vld [vmem:[#allocation11 + $0x60] sm:$0xff] }
  0xa3   : > { %1394 = vmatpush3.msra.mxu1 %v583_v17  ;;  %1422 = vmatprep.subr.mxu0 %v688_v30 }
  0xa4   : > { %1395 = vmatprep.subr.mxu1 %v582_v18  ;;  %1423 = vmatpush3.msra.mxu0 %v688_v30  ;;  %v919_v30 = vld [vmem:[#allocation11 + $0x58] sm:$0xff] }
  0xa5   : > { %1396 = vmatpush3.msra.mxu1 %v582_v18  ;;  %1424 = vmatprep.subr.mxu0 %v687_v31 }
  0xa6   : > { %1397 = vmatprep.subr.mxu1 %v581_v19  ;;  %1425 = vmatpush3.msra.mxu0 %v687_v31  ;;  %v918_v31 = vld [vmem:[#allocation11 + $0x50] sm:$0xff] }
  0xa7   : > { %1398 = vmatpush3.msra.mxu1 %v581_v19  ;;  %1426 = vmatprep.subr.mxu0 %v686_v32  ;;  %v783_v19 = vld [vmem:[#allocation10 + $0x20] sm:$0xff] }
  0xa8   : > { %1399 = vmatprep.subr.mxu1 %v580_v20  ;;  %1427 = vmatpush3.msra.mxu0 %v686_v32  ;;  %v917_v32 = vld [vmem:[#allocation11 + $0x48] sm:$0xff] }
  0xa9   : > { %1400 = vmatpush3.msra.mxu1 %v580_v20  ;;  %1428 = vmatprep.subr.mxu0 %v685_v42  ;;  %v782_v20 = vld [vmem:[#allocation10 + $0x18] sm:$0xff] }
  0xaa   : > { %1401 = vmatprep.subr.mxu1 %v579_v21  ;;  %1429 = vmatpush3.msra.mxu0 %v685_v42  ;;  %v1022_v42 = vld [vmem:[#allocation11 + $0xe8] sm:$0xff] }
  0xab   : > { %1402 = vmatpush3.msra.mxu1 %v579_v21  ;;  %1430 = vmatprep.subr.mxu0 %v684_v43  ;;  %v781_v21 = vld [vmem:[#allocation10 + $0x10] sm:$0xff] }
  0xac   : > { %1431 = vmatpush3.msra.mxu0 %v684_v43  ;;  %823 = vmatprep.subr.mxu1 %v810_v47  ;;  %v1018_v47 = vld [vmem:[#allocation11 + $0xc8] sm:$0xff] }
  0xad   : > { %1432 = vmatprep.subr.mxu0 %v683_v44 }
  0xae   : > { %1433 = vmatpush3.msra.mxu0 %v683_v44  ;;  %v1021_v44 = vld [vmem:[#allocation11 + $0xe0] sm:$0xff] }
  0xaf   : > { %1434 = vmatprep.subr.mxu0 %v682_v45 }
  0xb0   : > { %1435 = vmatpush3.msra.mxu0 %v682_v45  ;;  %v1020_v45 = vld [vmem:[#allocation11 + $0xd8] sm:$0xff] }
  0xb1   : > { %1436 = vmatprep.subr.mxu0 %v681_v46 }
  0xb2   : > { %1437 = vmatpush3.msra.mxu0 %v681_v46  ;;  %v1019_v46 = vld [vmem:[#allocation11 + $0xd0] sm:$0xff] }
  0xb3   : > { %1441 = vmatprep.subr.mxu0 %v923_v25 }
 0x152   : > { %v1370_v34 = vpop.f32.mrf.mxu0 }
 0x153   : > { %v572_v35 = vadd.f32 %v1370_v34, %v1265_v33  ;;  %v915_v34 = vld [vmem:[#allocation11 + $0x38] sm:$0xff] }
 0x154   : > { %v566_v36 = vpop.f32.mrf.mxu0 }
 0x155   : > { %v567_v37 = vadd.f32 %v1265_v33, %v566_v36  ;;  %v576_v38 = vmul.f32 0.2, %v572_v35  ;;  %v916_v33 = vld [vmem:[#allocation11 + $0x40] sm:$0xff]  ;;  %v913_v36 = vld [vmem:[#allocation11 + $0x28] sm:$0xff] }
 0x157   : > { %v575_v39 = vmul.f32 0.2, %v567_v37  ;;  %v578_v41 = vmax.f32 %v572_v35, %v576_v38  ;;  %v914_v35 = vld [vmem:[#allocation11 + $0x30] sm:$0xff]  ;;  %v1269_v38 = vld [vmem:[%s2198_s6] ss:$0 sm:$0xff] }
 0x159   : > { %v577_v40 = vmax.f32 %v567_v37, %v575_v39 }
 0x15b   : > { %1403 = vmatprep.mubr.f32.mxu1 %v577_v40 }
 0x15c   : > { %1404 = vmatmul.mubr.f32.vlgmr.msra.gmra.mxu1 %v578_v41  ;;  %v1023_v41 = vld [vmem:[#allocation11 + $0xf0] sm:$0xff] }
 0x15d   : > { %824 = vmatpush1.msra.mxu1 %v809_v48  ;;  %887 = vmatprep.mubr.f32.mxu1 %v1861_v24  ;;  %v1017_v48 = vld [vmem:[#allocation11 + $0xc0] sm:$0xff] }
 0x15e   : > { %825 = vmatprep.subr.mxu1 %v808_v49  ;;  %v1016_v49 = vld [vmem:[#allocation11 + $0xb8] sm:$0xff] }
 0x15f   : > { %826 = vmatpush1.msra.mxu1 %v807_v50  ;;  %v1015_v50 = vld [vmem:[#allocation11 + $0xb0] sm:$0xff] }
 0x160   : > { %827 = vmatprep.subr.mxu1 %v806_v51  ;;  %v912_v51 = vld [vmem:[#allocation11 + $0x20] sm:$0xff] }
 0x161   : > { %828 = vmatpush1.msra.mxu1 %v805_v52  ;;  %v1014_v52 = vld [vmem:[#allocation11 + $0xa8] sm:$0xff] }
 0x162   : > { %829 = vmatprep.subr.mxu1 %v804_v53  ;;  %v911_v53 = vld [vmem:[#allocation11 + $0x18] sm:$0xff] }
 0x163   : > { %830 = vmatpush1.msra.mxu1 %v803_v54  ;;  %v1013_v54 = vld [vmem:[#allocation11 + $0xa0] sm:$0xff] }
 0x164   : > { %831 = vmatprep.subr.mxu1 %v802_v55  ;;  %v910_v55 = vld [vmem:[#allocation11 + $0x10] sm:$0xff] }
 0x165   : > { %832 = vmatpush1.msra.mxu1 %v801_v56  ;;  %v1012_v56 = vld [vmem:[#allocation11 + $0x98] sm:$0xff] }
 0x166   : > { %833 = vmatprep.subr.mxu1 %v800_v57  ;;  %v909_v57 = vld [vmem:[#allocation11 + $0x8] sm:$0xff] }
 0x167   : > { %834 = vmatpush1.msra.mxu1 %v799_v58  ;;  %v1011_v58 = vld [vmem:[#allocation11 + $0x90] sm:$0xff] }
 0x168   : > { %835 = vmatprep.subr.mxu1 %v798_v59  ;;  %v908_v59 = vld [vmem:[#allocation11] sm:$0xff] }
 0x169   : > { %836 = vmatpush1.msra.mxu1 %v797_v60  ;;  %v1010_v60 = vld [vmem:[#allocation11 + $0x88] sm:$0xff] }
 0x16a   : > { %837 = vmatprep.subr.mxu1 %v796_v61  ;;  %v1009_v61 = vld [vmem:[#allocation11 + $0x80] sm:$0xff] }
 0x16b   : > { %838 = vmatpush1.msra.mxu1 %v795_v62  ;;  %v813_v62 = vlaneseq }
 0x16c   : > { %839 = vmatprep.subr.mxu1 %v794_v63 }
 0x16d   : > { %840 = vmatpush1.msra.mxu1 %v793_v0  ;;  %v814_v63 = vshrl.u32 %v813_v62, 7 }
 0x16e   : > { %841 = vmatprep.subr.mxu1 %v792_v1  ;;  %v811_v1 = vld [vmem:[%s2200_s8] sm:$0x3] }
 0x16f   : > { %842 = vmatpush1.msra.mxu1 %v791_v2  ;;  %v815_v0 = vsub.s32 0, %v814_v63  ;;  %v819_v2 = vsub.s32 1, %v814_v63 }
 0x170   : > { %843 = vmatprep.subr.mxu1 %v790_v3 }
 0x171   : > { %844 = vmatpush1.msra.mxu1 %v789_v4  ;;  %v816_v3 = vrot.slane %v811_v1, %v815_v0  ;;  %v820_v4 = vrot.slane %v811_v1, %v819_v2 }
 0x172   : > { %845 = vmatprep.subr.mxu1 %v788_v5 }
 0x173   : > { %846 = vmatpush1.msra.mxu1 %v787_v6 }
 0x174   : > { %847 = vmatprep.subr.mxu1 %v786_v7 }
 0x175   : > { %848 = vmatpush1.msra.mxu1 %v785_v8 }
 0x176   : > { %849 = vmatprep.subr.mxu1 %v784_v9 }
 0x177   : > { %850 = vmatpush1.msra.mxu1 %v783_v19 }
 0x178   : > { %851 = vmatprep.subr.mxu1 %v782_v20 }
 0x179   : > { %852 = vmatpush1.msra.mxu1 %v781_v21  ;;  %v1270_v21 = vld [vmem:[%s2202_s10] ss:$0 sm:$0xff] }
 0x17a   : > { %853 = vmatprep.subr.mxu1 %v780_v22 }
 0x17b   : > { %854 = vmatpush1.msra.mxu1 %v779_v23  ;;  %v1272_v23 = vld [vmem:[%s2202_s10 + $0x1] ss:$0 sm:$0xff] }
 0x17c   : > { %1476 = vmatprep.subr.mxu1 %v1024_v27 }
 0x21c   : > { %v1405_v11 = vpop.f32.mrf.mxu1 }
 0x21d   : > { %v674_v12 = vadd.f32 %v1405_v11, %v1268_v10 }
 0x21e   : > { %v668_v13 = vpop.f32.mrf.mxu1 }
 0x21f   : > { %v669_v14 = vadd.f32 %v1268_v10, %v668_v13  ;;  %v678_v15 = vmul.f32 0.2, %v674_v12 }
 0x221   : > { %v677_v16 = vmul.f32 0.2, %v669_v14  ;;  %v680_v18 = vmax.f32 %v674_v12, %v678_v15 }
 0x223   : > { %v679_v17 = vmax.f32 %v669_v14, %v677_v16 }
 0x225   : > { %1438 = vmatprep.mubr.f32.mxu0 %v679_v17 }
 0x226   : > { %1439 = vmatmul.mubr.f32.vlgmr.msra.gmra.mxu0 %v680_v18 }
 0x227   : > { %1442 = vmatpush3.msra.mxu0 %v923_v25 }
 0x228   : > { %1443 = vmatprep.subr.mxu0 %v922_v26 }
 0x229   : > { %1444 = vmatpush3.msra.mxu0 %v922_v26 }
 0x22a   : > { %1445 = vmatprep.subr.mxu0 %v921_v28 }
 0x22b   : > { %1446 = vmatpush3.msra.mxu0 %v921_v28 }
 0x22c   : > { %1447 = vmatprep.subr.mxu0 %v920_v29 }
 0x22d   : > { %1448 = vmatpush3.msra.mxu0 %v920_v29 }
 0x22e   : > { %1449 = vmatprep.subr.mxu0 %v919_v30 }
 0x22f   : > { %1450 = vmatpush3.msra.mxu0 %v919_v30 }
 0x230   : > { %1451 = vmatprep.subr.mxu0 %v918_v31 }
 0x231   : > { %1452 = vmatpush3.msra.mxu0 %v918_v31 }
 0x232   : > { %1453 = vmatprep.subr.mxu0 %v917_v32 }
 0x233   : > { %1454 = vmatpush3.msra.mxu0 %v917_v32 }
 0x234   : > { %1455 = vmatprep.subr.mxu0 %v916_v33 }
 0x235   : > { %1456 = vmatpush3.msra.mxu0 %v916_v33 }
 0x236   : > { %1457 = vmatprep.subr.mxu0 %v915_v34 }
 0x237   : > { %1458 = vmatpush3.msra.mxu0 %v915_v34 }
 0x238   : > { %1459 = vmatprep.subr.mxu0 %v914_v35 }
 0x239   : > { %1460 = vmatpush3.msra.mxu0 %v914_v35 }
 0x23a   : > { %1461 = vmatprep.subr.mxu0 %v913_v36 }
 0x23b   : > { %1462 = vmatpush3.msra.mxu0 %v913_v36 }
 0x23c   : > { %1463 = vmatprep.subr.mxu0 %v912_v51 }
 0x23d   : > { %1464 = vmatpush3.msra.mxu0 %v912_v51 }
 0x23e   : > { %1465 = vmatprep.subr.mxu0 %v911_v53 }
 0x23f   : > { %1466 = vmatpush3.msra.mxu0 %v911_v53 }
 0x240   : > { %1467 = vmatprep.subr.mxu0 %v910_v55 }
 0x241   : > { %1468 = vmatpush3.msra.mxu0 %v910_v55 }
 0x242   : > { %1469 = vmatprep.subr.mxu0 %v909_v57 }
 0x243   : > { %1470 = vmatpush3.msra.mxu0 %v909_v57 }
 0x244   : > { %1471 = vmatprep.subr.mxu0 %v908_v59 }
 0x245   : > { %1472 = vmatpush3.msra.mxu0 %v908_v59 }
 0x2e6   : > { %v1440_v37 = vpop.f32.mrf.mxu0 }
 0x2e7   : > { %v776_v43 = vadd.f32 %v1440_v37, %v1269_v38 }
 0x2e8   : > { %v770_v39 = vpop.f32.mrf.mxu0 }
 0x2e9   : > { %v771_v40 = vadd.f32 %v1269_v38, %v770_v39 }
 0x2eb   : > { %888 = vmatmul.mubr.f32.vlgmr.msra.gmra.mxu1 %v771_v40 }
 0x2ec   : > { %893 = vmatprep.mubr.f32.mxu1 %v1861_v24  ;;  %1477 = vmatpush3.msra.mxu1 %v1024_v27 }
 0x2ed   : > { %1478 = vmatprep.subr.mxu1 %v1023_v41 }
 0x2ee   : > { %1479 = vmatpush3.msra.mxu1 %v1023_v41 }
 0x2ef   : > { %894 = vmatmul.mubr.f32.gmra.mxu1 %v776_v43  ;;  %1480 = vmatprep.subr.mxu1 %v1022_v42 }
 0x2f0   : > { %1481 = vmatpush3.msra.mxu1 %v1022_v42 }
 0x2f1   : > { %1482 = vmatprep.subr.mxu1 %v1021_v44 }
 0x2f2   : > { %1483 = vmatpush3.msra.mxu1 %v1021_v44 }
 0x2f3   : > { %1484 = vmatprep.subr.mxu1 %v1020_v45 }
 0x2f4   : > { %1485 = vmatpush3.msra.mxu1 %v1020_v45 }
 0x2f5   : > { %1486 = vmatprep.subr.mxu1 %v1019_v46 }
 0x2f6   : > { %1487 = vmatpush3.msra.mxu1 %v1019_v46 }
 0x2f7   : > { %1488 = vmatprep.subr.mxu1 %v1018_v47 }
 0x2f8   : > { %1489 = vmatpush3.msra.mxu1 %v1018_v47 }
 0x2f9   : > { %1490 = vmatprep.subr.mxu1 %v1017_v48 }
 0x2fa   : > { %1491 = vmatpush3.msra.mxu1 %v1017_v48 }
 0x2fb   : > { %1492 = vmatprep.subr.mxu1 %v1016_v49 }
 0x2fc   : > { %1493 = vmatpush3.msra.mxu1 %v1016_v49 }
 0x2fd   : > { %1494 = vmatprep.subr.mxu1 %v1015_v50 }
 0x2fe   : > { %1495 = vmatpush3.msra.mxu1 %v1015_v50 }
 0x2ff   : > { %1496 = vmatprep.subr.mxu1 %v1014_v52 }
 0x300   : > { %1497 = vmatpush3.msra.mxu1 %v1014_v52 }
 0x301   : > { %1498 = vmatprep.subr.mxu1 %v1013_v54 }
 0x302   : > { %1499 = vmatpush3.msra.mxu1 %v1013_v54 }
 0x303   : > { %1500 = vmatprep.subr.mxu1 %v1012_v56 }
 0x304   : > { %1501 = vmatpush3.msra.mxu1 %v1012_v56 }
 0x305   : > { %1502 = vmatprep.subr.mxu1 %v1011_v58 }
 0x306   : > { %1503 = vmatpush3.msra.mxu1 %v1011_v58 }
 0x307   : > { %1504 = vmatprep.subr.mxu1 %v1010_v60 }
 0x308   : > { %1505 = vmatpush3.msra.mxu1 %v1010_v60 }
 0x309   : > { %1506 = vmatprep.subr.mxu1 %v1009_v61 }
 0x30a   : > { %1507 = vmatpush3.msra.mxu1 %v1009_v61 }
 0x3ab   : > { %v889_v5 = vpop.f32.mrf.mxu1 }
 0x3ac   : > { %v890_v6 = vadd.f32 %v889_v5, %v816_v3 }
 0x3ad   : > { %v891_v7 = vpop.f32.mrf.mxu1 }
 0x3ae   : > { %v900_v8 = vmul.f32 0.2, %v890_v6  ;;  %v892_v9 = vadd.f32 %v891_v7, %v820_v4 }
 0x3af   : > { %v895_v10 = vpop.f32.mrf.mxu1 }
 0x3b0   : > { %v904_v11 = vmax.f32 %v890_v6, %v900_v8  ;;  %v901_v12 = vmul.f32 0.2, %v892_v9  ;;  %v896_v13 = vadd.f32 %v895_v10, %v816_v3 }
 0x3b1   : > { %v897_v14 = vpop.f32.mrf.mxu1 }
 0x3b2   : > { %v905_v15 = vmax.f32 %v892_v9, %v901_v12  ;;  %v902_v16 = vmul.f32 0.2, %v896_v13  ;;  %v898_v17 = vadd.f32 %v897_v14, %v820_v4  ;;  %1473 = vmatprep.mubr.f32.mxu0 %v904_v11 }
 0x3b4   : > { %v906_v18 = vmax.f32 %v896_v13, %v902_v16  ;;  %v903_v19 = vmul.f32 0.2, %v898_v17  ;;  %1508 = vmatprep.mubr.f32.mxu1 %v905_v15 }
 0x3b6   : > { %v907_v20 = vmax.f32 %v898_v17, %v903_v19  ;;  %1474 = vmatmul.mubr.f32.vlgmr.msra.gmra.mxu0 %v906_v18 }
 0x3b8   : > { %1509 = vmatmul.mubr.f32.vlgmr.msra.gmra.mxu1 %v907_v20 }
 0x476   : > { %v1475_v22 = vpop.f32.mrf.mxu0 }
 0x477   : > { %v1003_v24 = vadd.f32 %v1475_v22, %v1270_v21 }
 0x478   : > { %v997_v25 = vpop.f32.mrf.mxu0  ;;  %v1510_v26 = vpop.f32.mrf.mxu1 }
 0x479   : > { %1007 = vst [vmem:[%s477_s9 + $0x10] sm:$0xff] %v1003_v24  ;;  %v998_v27 = vadd.f32 %v1270_v21, %v997_v25  ;;  %v1105_v28 = vadd.f32 %v1510_v26, %v1272_v23 }
 0x47a   : > { %v1099_v29 = vpop.f32.mrf.mxu1 }
 0x47b   : > { %1006 = vst [vmem:[%s477_s9] sm:$0xff] %v998_v27  ;;  %1109 = vst [vmem:[%s477_s9 + $0x18] sm:$0xff] %v1105_v28  ;;  %v1100_v30 = vadd.f32 %v1272_v23, %v1099_v29 }
 0x47d   : > { %1108 = vst [vmem:[%s477_s9 + $0x8] sm:$0xff] %v1100_v30 }
 0x47e   : > { %1786 = shalt.err (!%p1783_p3)
}
 0x47f   : > { %s1787_s5 = scalar_lea.hbm %s2149_s29, 512  ;;  %s1791_s14 = scalar_lea.hbm %s2203_s11, 1024 }
 0x480   : > { %p1788_p4 = scmp.ne.s32.totalorder %s2149_s29, %s1787_s5  ;;  %p1792_p2 = scmp.lt.s32.totalorder %s2149_s29, %s2203_s11 }
 0x481   : > { %p1793_p7 = scmp.lt.s32.totalorder %s1791_s14, %s1787_s5 }
 0x482   : > { %p1789_p12 = pnand %p1788_p4, %p2237_p11 }
 0x483   : > { %p1794_p8 = por %p1793_p7, %p1792_p2 }
 0x484   : > { %p1790_p6 = pneg %p1789_p12 }
 0x486   : > { %p1795_p10 = pnand %p1794_p8, %p1790_p6 }
 0x488   : > { %1798 = shalt.err (!%p1795_p10)
}
 0x489   : > { %s1863_s24 = smov 256   ;;  %s1864_s13 = smov 16  }
 0x48a   : > { %1533 = dma.vmem_to_hbm [thread:$0]  (%p2237_p11), %s2144_s21, 512, %s2149_s29, %s1111_s23, %s1863_s24, %s1863_s24, %s1864_s13  }
 0x48b PF: > { %s1140_s27 = sand.u32 1, %s1837_s17   ;;  %p2238_p13 = scmp.ne.s32.totalorder %s2225_s26, 0 }
 0x48c   : > { %p2239_p0 = scmp.ge.s32.totalorder %s1849_s20, 2  ;;  %s1141_s28 = scalar_lea.sflag [#allocation4], %s1140_s27 }
 0x48e   : > { %p1556_p5 = pnand %p2239_p0, %p2238_p13 }
 0x490   : > { %p1557_p9 = pneg %p1556_p5 }
 0x492   : > { %1832 = dma.done.wait (%p1557_p9), %s1141_s28, 512  }
 0x493   : > { %1834 = vsyncadd (%p1557_p9), %s1141_s28, 4294966784  ;;  %p27_p1 = scmp.ge.s32.totalorder %s2033_s30, 4   ;;  %s2240_s17 = smov %s1841_s18 }
 0x494   : > { %s2241_s18 = smov %s1845_s19  ;;  %s2242_s19 = smov %s2045_s22 }
 0x495   : > { %s2243_s20 = smov %s2033_s30  ;;  %29 = sbr.rel (!%p27_p1) target bundleno = 14 (0xe), region = 131 }
 0x49a   :  { %1146 = vsyncpa [#allocation3], 1 }
 0x49b   :  { %1148 = vsyncpa [#allocation3 + $0x1], 1 }
 0x49c   :  { %1149 = vsyncpa [#allocation6], 1 }
 0x49d   :  { %1150 = vsyncpa [#allocation9], 1 }
 0x49e   :  { %1151 = vsyncpa [#allocation12], 1 }
 0x49f   :  { %1152 = vsyncpa [#allocation4], 1 }
 0x4a0   :  { %1154 = vsyncpa [#allocation4 + $0x1], 1 }

</bundles_post_ra>
